<compile_context>
chip_gen: v5e
topology: v5e:2x2
jax: 0.10.0
libtpu: 0.0.40
codegen_flags: <defaults>
</compile_context>

<pallas_src>
import functools

import jax
import jax.numpy as jnp
from jax.experimental import pallas as pl
from jax.experimental.pallas import tpu as pltpu

n_embd = 384
num_heads = 3
head_size = 128          # num_heads * head_size == n_embd


# ----------------------------------------------------------------------------
# Fused kernel: QKV projection + H causal-attention heads + output projection,
# Bb batch elements per grid step.
# ----------------------------------------------------------------------------
def mha_fused_kernel(x_ref, wqkv_ref, wp_ref, bp_ref, o_ref, attn_ref, *, heads):
    # x_ref:    (Bb, T, C)  f32   Bb batch elements
    # wqkv_ref: (C, 3*C)    bf16  [Wq*scale | Wk | Wv], head-major columns
    # wp_ref:   (C, C)      bf16  output projection (x @ W layout)
    # bp_ref:   (1, C)      f32   output projection bias
    # o_ref:    (Bb, T, C)  f32
    # attn_ref: (Bb*T, C)   f32   VMEM scratch: concatenated head outputs
    Bb, T, C = x_ref.shape
    hs = C // heads

    # One wide QKV matmul over all Bb*T rows: bf16 operands, f32 accumulation.
    x2 = x_ref[...].reshape(Bb * T, C).astype(jnp.bfloat16)
    qkv = jnp.dot(x2, wqkv_ref[...],
                  preferred_element_type=jnp.float32)            # (Bb*T, 3C)

    # Causal mask, built once (loop-invariant across batch elements / heads).
    row = jax.lax.broadcasted_iota(jnp.int32, (T, T), 0)
    col = jax.lax.broadcasted_iota(jnp.int32, (T, T), 1)
    masked = col > row                                           # True -> masked
    neg_big = jnp.float32(-1e30)     # finite: robust even for fully-masked rows

    for b in range(Bb):              # static unroll over the batch block
        qkv_b = qkv[b * T:(b + 1) * T]                           # (T, 3C)
        for h in range(heads):       # static unroll over heads
            q = qkv_b[:, h * hs:(h + 1) * hs]                    # (T, hs), pre-scaled
            k = qkv_b[:, C + h * hs: C + (h + 1) * hs]           # (T, hs)
            v = qkv_b[:, 2 * C + h * hs: 2 * C + (h + 1) * hs]   # (T, hs)

            # NT matmul: contract the hs axis of both operands -> no k.T emitted.
            wei = jax.lax.dot_general(
                q.astype(jnp.bfloat16), k.astype(jnp.bfloat16),
                dimension_numbers=(((1,), (1,)), ((), ())),
                preferred_element_type=jnp.float32)              # (T, T)
            wei = jnp.where(masked, neg_big, wei)

            # Softmax in f32; reciprocal goes to the otherwise-idle EUP slot.
            m = jnp.max(wei, axis=-1, keepdims=True)
            p = jnp.exp(wei - m)
            denom = jnp.sum(p, axis=-1, keepdims=True)
            probs = p * pl.reciprocal(denom, approx=True)

            # Write this head's output at its (row, column) offset in scratch.
            attn_ref[b * T:(b + 1) * T, h * hs:(h + 1) * hs] = jnp.dot(
                probs.astype(jnp.bfloat16), v.astype(jnp.bfloat16),
                preferred_element_type=jnp.float32)              # (T, hs)

    # Fused output projection + bias over all Bb*T rows (dropout == identity).
    out = jnp.dot(attn_ref[...].astype(jnp.bfloat16), wp_ref[...],
                  preferred_element_type=jnp.float32) + bp_ref[...]
    o_ref[...] = out.reshape(Bb, T, C)


# ----------------------------------------------------------------------------
# One-time weight packing (hoisted out of the per-call hot path).
# ----------------------------------------------------------------------------
def pack_mha_weights(wk, wq, wv, wp, bp):
    """wk/wq/wv: (H, C, hs) transposed nn.Linear weights, stacked over heads.

    Returns:
      wqkv: (C, 3C) bf16, columns [Wq*scale | Wk | Wv] (head-major inside each
            third), with the softmax scale folded into the query weights.
      wp:   (C, C) bf16.
      bp:   (1, C) f32.
    """
    H, C, hs = wq.shape
    scale = C ** (-0.5)   # PyTorch module scales by n_embd**-0.5 (not hs**-0.5)

    def cat_heads(w):                       # (H, C, hs) -> (C, H*hs)
        return jnp.transpose(w, (1, 0, 2)).reshape(C, H * hs)

    wqkv = jnp.concatenate(
        [cat_heads(wq) * scale, cat_heads(wk), cat_heads(wv)], axis=1
    ).astype(jnp.bfloat16)                                       # (C, 3*C)
    return wqkv, wp.astype(jnp.bfloat16), bp.reshape(1, C).astype(jnp.float32)


def _pick_batch_block(B, T, C):
    """Largest divisor Bb of B whose double-buffered x/out f32 blocks fit a
    conservative VMEM budget, stopping once Bb*T reaches the MXU depth."""
    budget = 24 * 1024 * 1024          # headroom under the 32 MiB scoped limit
    target_rows = 256                  # MXU contraction/row depth on v6e/v7x
    best = 1
    for bb in range(1, B + 1):
        if B % bb:
            continue
        io_bytes = 2 * 2 * bb * T * C * 4      # (x + out) x double-buffer, f32
        if io_bytes > budget:
            break
        best = bb
        if bb * T >= target_rows:
            break
    return best


@functools.partial(jax.jit, static_argnames=("heads",))
def multi_head_attention(x, wqkv, wp_bf, bp2, *, heads):
    """x: (B, T, C) f32; wqkv: (C, 3C) bf16 (query third pre-scaled);
    wp_bf: (C, C) bf16; bp2: (1, C) f32."""
    B, T, C = x.shape
    Bb = _pick_batch_block(B, T, C)
    kernel = functools.partial(mha_fused_kernel, heads=heads)

    return pl.pallas_call(
        kernel,
        out_shape=jax.ShapeDtypeStruct((B, T, C), jnp.float32),
        grid_spec=pltpu.PrefetchScalarGridSpec(
            num_scalar_prefetch=0,
            grid=(B // Bb,),
            in_specs=[
                pl.BlockSpec((Bb, T, C), lambda b: (b, 0, 0)),
                # Constant index_maps + single buffering -> weights DMA'd once,
                # VMEM-resident, no second never-used buffer.
                pl.BlockSpec((C, 3 * C), lambda b: (0, 0),
                             pipeline_mode=pl.Buffered(buffer_count=1)),
                pl.BlockSpec((C, C), lambda b: (0, 0),
                             pipeline_mode=pl.Buffered(buffer_count=1)),
                pl.BlockSpec((1, C), lambda b: (0, 0),
                             pipeline_mode=pl.Buffered(buffer_count=1)),
            ],
            out_specs=pl.BlockSpec((Bb, T, C), lambda b: (b, 0, 0)),
            scratch_shapes=[pltpu.VMEM((Bb * T, C), jnp.float32)],
        ),
        compiler_params=pltpu.CompilerParams(
            dimension_semantics=("parallel",),
            vmem_limit_bytes=32 * 1024 * 1024,
        ),
    )(x, wqkv, wp_bf, bp2)


# ----------------------------------------------------------------------------
# Pure-JAX f32 reference (eval-mode semantics of the PyTorch module).
# ----------------------------------------------------------------------------
def reference(x, wk, wq, wv, wp, bp):
    B, T, C = x.shape
    outs = []
    for h in range(wk.shape[0]):
        k = x @ wk[h]
        q = x @ wq[h]
        v = x @ wv[h]
        wei = (q @ jnp.swapaxes(k, -2, -1)) * (C ** -0.5)
        mask = jnp.tril(jnp.ones((T, T), dtype=bool))
        wei = jnp.where(mask, wei, -jnp.inf)
        wei = jax.nn.softmax(wei, axis=-1)
        outs.append(wei @ v)
    cat = jnp.concatenate(outs, axis=-1)
    return cat @ wp + bp


if __name__ == "__main__":
    B, T = 2, 8
    key = jax.random.PRNGKey(0)
    kx, kk, kq, kv, kp, kb = jax.random.split(key, 6)

    x = jax.random.normal(kx, (B, T, n_embd), dtype=jnp.float32)
    # nn.Linear(n_embd, head_size) weight is (head_size, n_embd); we store the
    # transposed (n_embd, head_size) version, stacked over heads.
    scale_in = 1.0 / jnp.sqrt(n_embd)
    wk = jax.random.uniform(kk, (num_heads, n_embd, head_size), jnp.float32,
                            -scale_in, scale_in)
    wq = jax.random.uniform(kq, (num_heads, n_embd, head_size), jnp.float32,
                            -scale_in, scale_in)
    wv = jax.random.uniform(kv, (num_heads, n_embd, head_size), jnp.float32,
                            -scale_in, scale_in)
    wp = jax.random.uniform(kp, (n_embd, n_embd), jnp.float32,
                            -scale_in, scale_in)
    bp = jax.random.uniform(kb, (n_embd,), jnp.float32, -scale_in, scale_in)

    # Pack weights ONCE (outside the per-call hot path) and reuse across calls.
    wqkv, wp_bf, bp2 = pack_mha_weights(wk, wq, wv, wp, bp)
    wqkv, wp_bf, bp2 = jax.block_until_ready((wqkv, wp_bf, bp2))

    out = multi_head_attention(x, wqkv, wp_bf, bp2, heads=num_heads)
    out = jax.block_until_ready(out)

    ref = reference(x, wk, wq, wv, wp, bp)
    assert out.shape == (B, T, n_embd)
    # bf16 MXU operands (f32 accumulation) + approx reciprocal -> loose tol.
    assert jnp.allclose(out, ref, atol=2e-2, rtol=2e-2), "mismatch vs reference"

    print("KERNEL_OK")
</pallas_src>

<mosaic_0001>
module attributes {stable_mosaic.version = 11 : i64} {
  func.func @mha_fused_kernel(%arg0: i32, %arg1: memref<2x8x384xf32, #tpu.memory_space<vmem>>, %arg2: memref<384x1152xbf16, #tpu.memory_space<vmem>>, %arg3: memref<384x384xbf16, #tpu.memory_space<vmem>>, %arg4: memref<1x384xf32, #tpu.memory_space<vmem>>, %arg5: memref<2x8x384xf32, #tpu.memory_space<vmem>>, %arg6: memref<16x384xf32, #tpu.memory_space<vmem>>) attributes {dimension_semantics = [#tpu.dimension_semantics<parallel>], iteration_bounds = array<i64: 1>, scalar_prefetch = 0 : i64, scratch_operands = 1 : i64, tpu.core_type = #tpu.core_type<tc>, window_params = [{transform_indices = @transform_0, window_bounds = array<i64: 2, 8, 384>}, {pipeline_mode = #tpu.pipeline_mode<synchronous>, transform_indices = @transform_1, window_bounds = array<i64: 384, 1152>}, {pipeline_mode = #tpu.pipeline_mode<synchronous>, transform_indices = @transform_2, window_bounds = array<i64: 384, 384>}, {pipeline_mode = #tpu.pipeline_mode<synchronous>, transform_indices = @transform_3, window_bounds = array<i64: 1, 384>}, {transform_indices = @transform_4, window_bounds = array<i64: 2, 8, 384>}]} {
    %c0 = arith.constant 0 : index
    %c0_0 = arith.constant 0 : index
    %c0_1 = arith.constant 0 : index
    %0 = vector.load %arg1[%c0, %c0_0, %c0_1] : memref<2x8x384xf32, #tpu.memory_space<vmem>>, vector<2x8x384xf32>
    %1 = vector.shape_cast %0 : vector<2x8x384xf32> to vector<16x384xf32>
    %2 = arith.truncf %1 : vector<16x384xf32> to vector<16x384xbf16>
    %c0_2 = arith.constant 0 : index
    %c0_3 = arith.constant 0 : index
    %3 = vector.load %arg2[%c0_2, %c0_3] : memref<384x1152xbf16, #tpu.memory_space<vmem>>, vector<384x1152xbf16>
    %cst = arith.constant dense<0.000000e+00> : vector<16x1152xf32>
    %4 = tpu.matmul %2, %3, %cst {dimension_numbers = #tpu.dot_dimension_numbers<[1], [0], [0], [1], [0, 0, 1, 1], [], []>} : vector<16x384xbf16>, vector<384x1152xbf16>, vector<16x1152xf32> -> vector<16x1152xf32>
    %5 = tpu.iota {dimensions = array<i32: 0>} : vector<8x8xi32>
    %6 = tpu.iota {dimensions = array<i32: 1>} : vector<8x8xi32>
    %7 = arith.cmpi sgt, %6, %5 : vector<8x8xi32>
    %8 = vector.extract_strided_slice %4 {offsets = [0, 0], sizes = [8, 1152], strides = [1, 1]} : vector<16x1152xf32> to vector<8x1152xf32>
    %9 = vector.extract_strided_slice %8 {offsets = [0, 0], sizes = [8, 128], strides = [1, 1]} : vector<8x1152xf32> to vector<8x128xf32>
    %10 = vector.extract_strided_slice %8 {offsets = [0, 384], sizes = [8, 128], strides = [1, 1]} : vector<8x1152xf32> to vector<8x128xf32>
    %11 = vector.extract_strided_slice %8 {offsets = [0, 768], sizes = [8, 128], strides = [1, 1]} : vector<8x1152xf32> to vector<8x128xf32>
    %12 = arith.truncf %9 : vector<8x128xf32> to vector<8x128xbf16>
    %13 = arith.truncf %10 : vector<8x128xf32> to vector<8x128xbf16>
    %cst_4 = arith.constant dense<0.000000e+00> : vector<8x8xf32>
    %14 = tpu.matmul %12, %13, %cst_4 {dimension_numbers = #tpu.dot_dimension_numbers<[1], [1], [0], [0], [0, 0, 1, 0], [], []>} : vector<8x128xbf16>, vector<8x128xbf16>, vector<8x8xf32> -> vector<8x8xf32>
    %cst_5 = arith.constant -1.000000e+30 : f32
    %15 = vector.broadcast %cst_5 : f32 to vector<8x8xf32>
    %16 = arith.select %7, %15, %14 : vector<8x8xi1>, vector<8x8xf32>
    %cst_6 = arith.constant dense<0xFF800000> : vector<8xf32>
    %17 = vector.multi_reduction <maximumf>, %16, %cst_6 [1] : vector<8x8xf32> to vector<8xf32>
    %18 = vector.shape_cast %17 : vector<8xf32> to vector<8x1xf32>
    %19 = vector.broadcast %18 : vector<8x1xf32> to vector<8x8xf32>
    %20 = arith.subf %16, %19 : vector<8x8xf32>
    %21 = math.exp %20 : vector<8x8xf32>
    %cst_7 = arith.constant dense<0.000000e+00> : vector<8xf32>
    %22 = vector.multi_reduction <add>, %21, %cst_7 [1] : vector<8x8xf32> to vector<8xf32>
    %23 = vector.shape_cast %22 : vector<8xf32> to vector<8x1xf32>
    %24 = tpu.reciprocal %23 {approx = true} : vector<8x1xf32> -> vector<8x1xf32>
    %25 = vector.broadcast %24 : vector<8x1xf32> to vector<8x8xf32>
    %26 = arith.mulf %21, %25 : vector<8x8xf32>
    %27 = arith.truncf %26 : vector<8x8xf32> to vector<8x8xbf16>
    %28 = arith.truncf %11 : vector<8x128xf32> to vector<8x128xbf16>
    %cst_8 = arith.constant dense<0.000000e+00> : vector<8x128xf32>
    %29 = tpu.matmul %27, %28, %cst_8 {dimension_numbers = #tpu.dot_dimension_numbers<[1], [0], [0], [1], [0, 0, 1, 1], [], []>} : vector<8x8xbf16>, vector<8x128xbf16>, vector<8x128xf32> -> vector<8x128xf32>
    %c0_9 = arith.constant 0 : index
    %c0_10 = arith.constant 0 : index
    %30 = vector.load %arg6[%c0_9, %c0_10] : memref<16x384xf32, #tpu.memory_space<vmem>>, vector<8x128xf32>
    tpu.vector_store %arg6[%c0_9, %c0_10], %29 {strides = array<i32>} : memref<16x384xf32, #tpu.memory_space<vmem>>, vector<8x128xf32>,
    %31 = vector.extract_strided_slice %8 {offsets = [0, 128], sizes = [8, 128], strides = [1, 1]} : vector<8x1152xf32> to vector<8x128xf32>
    %32 = vector.extract_strided_slice %8 {offsets = [0, 512], sizes = [8, 128], strides = [1, 1]} : vector<8x1152xf32> to vector<8x128xf32>
    %33 = vector.extract_strided_slice %8 {offsets = [0, 896], sizes = [8, 128], strides = [1, 1]} : vector<8x1152xf32> to vector<8x128xf32>
    %34 = arith.truncf %31 : vector<8x128xf32> to vector<8x128xbf16>
    %35 = arith.truncf %32 : vector<8x128xf32> to vector<8x128xbf16>
    %cst_11 = arith.constant dense<0.000000e+00> : vector<8x8xf32>
    %36 = tpu.matmul %34, %35, %cst_11 {dimension_numbers = #tpu.dot_dimension_numbers<[1], [1], [0], [0], [0, 0, 1, 0], [], []>} : vector<8x128xbf16>, vector<8x128xbf16>, vector<8x8xf32> -> vector<8x8xf32>
    %cst_12 = arith.constant -1.000000e+30 : f32
    %37 = vector.broadcast %cst_12 : f32 to vector<8x8xf32>
    %38 = arith.select %7, %37, %36 : vector<8x8xi1>, vector<8x8xf32>
    %cst_13 = arith.constant dense<0xFF800000> : vector<8xf32>
    %39 = vector.multi_reduction <maximumf>, %38, %cst_13 [1] : vector<8x8xf32> to vector<8xf32>
    %40 = vector.shape_cast %39 : vector<8xf32> to vector<8x1xf32>
    %41 = vector.broadcast %40 : vector<8x1xf32> to vector<8x8xf32>
    %42 = arith.subf %38, %41 : vector<8x8xf32>
    %43 = math.exp %42 : vector<8x8xf32>
    %cst_14 = arith.constant dense<0.000000e+00> : vector<8xf32>
    %44 = vector.multi_reduction <add>, %43, %cst_14 [1] : vector<8x8xf32> to vector<8xf32>
    %45 = vector.shape_cast %44 : vector<8xf32> to vector<8x1xf32>
    %46 = tpu.reciprocal %45 {approx = true} : vector<8x1xf32> -> vector<8x1xf32>
    %47 = vector.broadcast %46 : vector<8x1xf32> to vector<8x8xf32>
    %48 = arith.mulf %43, %47 : vector<8x8xf32>
    %49 = arith.truncf %48 : vector<8x8xf32> to vector<8x8xbf16>
    %50 = arith.truncf %33 : vector<8x128xf32> to vector<8x128xbf16>
    %cst_15 = arith.constant dense<0.000000e+00> : vector<8x128xf32>
    %51 = tpu.matmul %49, %50, %cst_15 {dimension_numbers = #tpu.dot_dimension_numbers<[1], [0], [0], [1], [0, 0, 1, 1], [], []>} : vector<8x8xbf16>, vector<8x128xbf16>, vector<8x128xf32> -> vector<8x128xf32>
    %c0_16 = arith.constant 0 : index
    %c128 = arith.constant 128 : index
    %52 = vector.load %arg6[%c0_16, %c128] : memref<16x384xf32, #tpu.memory_space<vmem>>, vector<8x128xf32>
    tpu.vector_store %arg6[%c0_16, %c128], %51 {strides = array<i32>} : memref<16x384xf32, #tpu.memory_space<vmem>>, vector<8x128xf32>,
    %53 = vector.extract_strided_slice %8 {offsets = [0, 256], sizes = [8, 128], strides = [1, 1]} : vector<8x1152xf32> to vector<8x128xf32>
    %54 = vector.extract_strided_slice %8 {offsets = [0, 640], sizes = [8, 128], strides = [1, 1]} : vector<8x1152xf32> to vector<8x128xf32>
    %55 = vector.extract_strided_slice %8 {offsets = [0, 1024], sizes = [8, 128], strides = [1, 1]} : vector<8x1152xf32> to vector<8x128xf32>
    %56 = arith.truncf %53 : vector<8x128xf32> to vector<8x128xbf16>
    %57 = arith.truncf %54 : vector<8x128xf32> to vector<8x128xbf16>
    %cst_17 = arith.constant dense<0.000000e+00> : vector<8x8xf32>
    %58 = tpu.matmul %56, %57, %cst_17 {dimension_numbers = #tpu.dot_dimension_numbers<[1], [1], [0], [0], [0, 0, 1, 0], [], []>} : vector<8x128xbf16>, vector<8x128xbf16>, vector<8x8xf32> -> vector<8x8xf32>
    %cst_18 = arith.constant -1.000000e+30 : f32
    %59 = vector.broadcast %cst_18 : f32 to vector<8x8xf32>
    %60 = arith.select %7, %59, %58 : vector<8x8xi1>, vector<8x8xf32>
    %cst_19 = arith.constant dense<0xFF800000> : vector<8xf32>
    %61 = vector.multi_reduction <maximumf>, %60, %cst_19 [1] : vector<8x8xf32> to vector<8xf32>
    %62 = vector.shape_cast %61 : vector<8xf32> to vector<8x1xf32>
    %63 = vector.broadcast %62 : vector<8x1xf32> to vector<8x8xf32>
    %64 = arith.subf %60, %63 : vector<8x8xf32>
    %65 = math.exp %64 : vector<8x8xf32>
    %cst_20 = arith.constant dense<0.000000e+00> : vector<8xf32>
    %66 = vector.multi_reduction <add>, %65, %cst_20 [1] : vector<8x8xf32> to vector<8xf32>
    %67 = vector.shape_cast %66 : vector<8xf32> to vector<8x1xf32>
    %68 = tpu.reciprocal %67 {approx = true} : vector<8x1xf32> -> vector<8x1xf32>
    %69 = vector.broadcast %68 : vector<8x1xf32> to vector<8x8xf32>
    %70 = arith.mulf %65, %69 : vector<8x8xf32>
    %71 = arith.truncf %70 : vector<8x8xf32> to vector<8x8xbf16>
    %72 = arith.truncf %55 : vector<8x128xf32> to vector<8x128xbf16>
    %cst_21 = arith.constant dense<0.000000e+00> : vector<8x128xf32>
    %73 = tpu.matmul %71, %72, %cst_21 {dimension_numbers = #tpu.dot_dimension_numbers<[1], [0], [0], [1], [0, 0, 1, 1], [], []>} : vector<8x8xbf16>, vector<8x128xbf16>, vector<8x128xf32> -> vector<8x128xf32>
    %c0_22 = arith.constant 0 : index
    %c256 = arith.constant 256 : index
    %74 = vector.load %arg6[%c0_22, %c256] : memref<16x384xf32, #tpu.memory_space<vmem>>, vector<8x128xf32>
    tpu.vector_store %arg6[%c0_22, %c256], %73 {strides = array<i32>} : memref<16x384xf32, #tpu.memory_space<vmem>>, vector<8x128xf32>,
    %75 = vector.extract_strided_slice %4 {offsets = [8, 0], sizes = [8, 1152], strides = [1, 1]} : vector<16x1152xf32> to vector<8x1152xf32>
    %76 = vector.extract_strided_slice %75 {offsets = [0, 0], sizes = [8, 128], strides = [1, 1]} : vector<8x1152xf32> to vector<8x128xf32>
    %77 = vector.extract_strided_slice %75 {offsets = [0, 384], sizes = [8, 128], strides = [1, 1]} : vector<8x1152xf32> to vector<8x128xf32>
    %78 = vector.extract_strided_slice %75 {offsets = [0, 768], sizes = [8, 128], strides = [1, 1]} : vector<8x1152xf32> to vector<8x128xf32>
    %79 = arith.truncf %76 : vector<8x128xf32> to vector<8x128xbf16>
    %80 = arith.truncf %77 : vector<8x128xf32> to vector<8x128xbf16>
    %cst_23 = arith.constant dense<0.000000e+00> : vector<8x8xf32>
    %81 = tpu.matmul %79, %80, %cst_23 {dimension_numbers = #tpu.dot_dimension_numbers<[1], [1], [0], [0], [0, 0, 1, 0], [], []>} : vector<8x128xbf16>, vector<8x128xbf16>, vector<8x8xf32> -> vector<8x8xf32>
    %cst_24 = arith.constant -1.000000e+30 : f32
    %82 = vector.broadcast %cst_24 : f32 to vector<8x8xf32>
    %83 = arith.select %7, %82, %81 : vector<8x8xi1>, vector<8x8xf32>
    %cst_25 = arith.constant dense<0xFF800000> : vector<8xf32>
    %84 = vector.multi_reduction <maximumf>, %83, %cst_25 [1] : vector<8x8xf32> to vector<8xf32>
    %85 = vector.shape_cast %84 : vector<8xf32> to vector<8x1xf32>
    %86 = vector.broadcast %85 : vector<8x1xf32> to vector<8x8xf32>
    %87 = arith.subf %83, %86 : vector<8x8xf32>
    %88 = math.exp %87 : vector<8x8xf32>
    %cst_26 = arith.constant dense<0.000000e+00> : vector<8xf32>
    %89 = vector.multi_reduction <add>, %88, %cst_26 [1] : vector<8x8xf32> to vector<8xf32>
    %90 = vector.shape_cast %89 : vector<8xf32> to vector<8x1xf32>
    %91 = tpu.reciprocal %90 {approx = true} : vector<8x1xf32> -> vector<8x1xf32>
    %92 = vector.broadcast %91 : vector<8x1xf32> to vector<8x8xf32>
    %93 = arith.mulf %88, %92 : vector<8x8xf32>
    %94 = arith.truncf %93 : vector<8x8xf32> to vector<8x8xbf16>
    %95 = arith.truncf %78 : vector<8x128xf32> to vector<8x128xbf16>
    %cst_27 = arith.constant dense<0.000000e+00> : vector<8x128xf32>
    %96 = tpu.matmul %94, %95, %cst_27 {dimension_numbers = #tpu.dot_dimension_numbers<[1], [0], [0], [1], [0, 0, 1, 1], [], []>} : vector<8x8xbf16>, vector<8x128xbf16>, vector<8x128xf32> -> vector<8x128xf32>
    %c8 = arith.constant 8 : index
    %c0_28 = arith.constant 0 : index
    %97 = vector.load %arg6[%c8, %c0_28] : memref<16x384xf32, #tpu.memory_space<vmem>>, vector<8x128xf32>
    tpu.vector_store %arg6[%c8, %c0_28], %96 {strides = array<i32>} : memref<16x384xf32, #tpu.memory_space<vmem>>, vector<8x128xf32>,
    %98 = vector.extract_strided_slice %75 {offsets = [0, 128], sizes = [8, 128], strides = [1, 1]} : vector<8x1152xf32> to vector<8x128xf32>
    %99 = vector.extract_strided_slice %75 {offsets = [0, 512], sizes = [8, 128], strides = [1, 1]} : vector<8x1152xf32> to vector<8x128xf32>
    %100 = vector.extract_strided_slice %75 {offsets = [0, 896], sizes = [8, 128], strides = [1, 1]} : vector<8x1152xf32> to vector<8x128xf32>
    %101 = arith.truncf %98 : vector<8x128xf32> to vector<8x128xbf16>
    %102 = arith.truncf %99 : vector<8x128xf32> to vector<8x128xbf16>
    %cst_29 = arith.constant dense<0.000000e+00> : vector<8x8xf32>
    %103 = tpu.matmul %101, %102, %cst_29 {dimension_numbers = #tpu.dot_dimension_numbers<[1], [1], [0], [0], [0, 0, 1, 0], [], []>} : vector<8x128xbf16>, vector<8x128xbf16>, vector<8x8xf32> -> vector<8x8xf32>
    %cst_30 = arith.constant -1.000000e+30 : f32
    %104 = vector.broadcast %cst_30 : f32 to vector<8x8xf32>
    %105 = arith.select %7, %104, %103 : vector<8x8xi1>, vector<8x8xf32>
    %cst_31 = arith.constant dense<0xFF800000> : vector<8xf32>
    %106 = vector.multi_reduction <maximumf>, %105, %cst_31 [1] : vector<8x8xf32> to vector<8xf32>
    %107 = vector.shape_cast %106 : vector<8xf32> to vector<8x1xf32>
    %108 = vector.broadcast %107 : vector<8x1xf32> to vector<8x8xf32>
    %109 = arith.subf %105, %108 : vector<8x8xf32>
    %110 = math.exp %109 : vector<8x8xf32>
    %cst_32 = arith.constant dense<0.000000e+00> : vector<8xf32>
    %111 = vector.multi_reduction <add>, %110, %cst_32 [1] : vector<8x8xf32> to vector<8xf32>
    %112 = vector.shape_cast %111 : vector<8xf32> to vector<8x1xf32>
    %113 = tpu.reciprocal %112 {approx = true} : vector<8x1xf32> -> vector<8x1xf32>
    %114 = vector.broadcast %113 : vector<8x1xf32> to vector<8x8xf32>
    %115 = arith.mulf %110, %114 : vector<8x8xf32>
    %116 = arith.truncf %115 : vector<8x8xf32> to vector<8x8xbf16>
    %117 = arith.truncf %100 : vector<8x128xf32> to vector<8x128xbf16>
    %cst_33 = arith.constant dense<0.000000e+00> : vector<8x128xf32>
    %118 = tpu.matmul %116, %117, %cst_33 {dimension_numbers = #tpu.dot_dimension_numbers<[1], [0], [0], [1], [0, 0, 1, 1], [], []>} : vector<8x8xbf16>, vector<8x128xbf16>, vector<8x128xf32> -> vector<8x128xf32>
    %c8_34 = arith.constant 8 : index
    %c128_35 = arith.constant 128 : index
    %119 = vector.load %arg6[%c8_34, %c128_35] : memref<16x384xf32, #tpu.memory_space<vmem>>, vector<8x128xf32>
    tpu.vector_store %arg6[%c8_34, %c128_35], %118 {strides = array<i32>} : memref<16x384xf32, #tpu.memory_space<vmem>>, vector<8x128xf32>,
    %120 = vector.extract_strided_slice %75 {offsets = [0, 256], sizes = [8, 128], strides = [1, 1]} : vector<8x1152xf32> to vector<8x128xf32>
    %121 = vector.extract_strided_slice %75 {offsets = [0, 640], sizes = [8, 128], strides = [1, 1]} : vector<8x1152xf32> to vector<8x128xf32>
    %122 = vector.extract_strided_slice %75 {offsets = [0, 1024], sizes = [8, 128], strides = [1, 1]} : vector<8x1152xf32> to vector<8x128xf32>
    %123 = arith.truncf %120 : vector<8x128xf32> to vector<8x128xbf16>
    %124 = arith.truncf %121 : vector<8x128xf32> to vector<8x128xbf16>
    %cst_36 = arith.constant dense<0.000000e+00> : vector<8x8xf32>
    %125 = tpu.matmul %123, %124, %cst_36 {dimension_numbers = #tpu.dot_dimension_numbers<[1], [1], [0], [0], [0, 0, 1, 0], [], []>} : vector<8x128xbf16>, vector<8x128xbf16>, vector<8x8xf32> -> vector<8x8xf32>
    %cst_37 = arith.constant -1.000000e+30 : f32
    %126 = vector.broadcast %cst_37 : f32 to vector<8x8xf32>
    %127 = arith.select %7, %126, %125 : vector<8x8xi1>, vector<8x8xf32>
    %cst_38 = arith.constant dense<0xFF800000> : vector<8xf32>
    %128 = vector.multi_reduction <maximumf>, %127, %cst_38 [1] : vector<8x8xf32> to vector<8xf32>
    %129 = vector.shape_cast %128 : vector<8xf32> to vector<8x1xf32>
    %130 = vector.broadcast %129 : vector<8x1xf32> to vector<8x8xf32>
    %131 = arith.subf %127, %130 : vector<8x8xf32>
    %132 = math.exp %131 : vector<8x8xf32>
    %cst_39 = arith.constant dense<0.000000e+00> : vector<8xf32>
    %133 = vector.multi_reduction <add>, %132, %cst_39 [1] : vector<8x8xf32> to vector<8xf32>
    %134 = vector.shape_cast %133 : vector<8xf32> to vector<8x1xf32>
    %135 = tpu.reciprocal %134 {approx = true} : vector<8x1xf32> -> vector<8x1xf32>
    %136 = vector.broadcast %135 : vector<8x1xf32> to vector<8x8xf32>
    %137 = arith.mulf %132, %136 : vector<8x8xf32>
    %138 = arith.truncf %137 : vector<8x8xf32> to vector<8x8xbf16>
    %139 = arith.truncf %122 : vector<8x128xf32> to vector<8x128xbf16>
    %cst_40 = arith.constant dense<0.000000e+00> : vector<8x128xf32>
    %140 = tpu.matmul %138, %139, %cst_40 {dimension_numbers = #tpu.dot_dimension_numbers<[1], [0], [0], [1], [0, 0, 1, 1], [], []>} : vector<8x8xbf16>, vector<8x128xbf16>, vector<8x128xf32> -> vector<8x128xf32>
    %c8_41 = arith.constant 8 : index
    %c256_42 = arith.constant 256 : index
    %141 = vector.load %arg6[%c8_41, %c256_42] : memref<16x384xf32, #tpu.memory_space<vmem>>, vector<8x128xf32>
    tpu.vector_store %arg6[%c8_41, %c256_42], %140 {strides = array<i32>} : memref<16x384xf32, #tpu.memory_space<vmem>>, vector<8x128xf32>,
    %c0_43 = arith.constant 0 : index
    %c0_44 = arith.constant 0 : index
    %142 = vector.load %arg6[%c0_43, %c0_44] : memref<16x384xf32, #tpu.memory_space<vmem>>, vector<16x384xf32>
    %143 = arith.truncf %142 : vector<16x384xf32> to vector<16x384xbf16>
    %c0_45 = arith.constant 0 : index
    %c0_46 = arith.constant 0 : index
    %144 = vector.load %arg3[%c0_45, %c0_46] : memref<384x384xbf16, #tpu.memory_space<vmem>>, vector<384x384xbf16>
    %cst_47 = arith.constant dense<0.000000e+00> : vector<16x384xf32>
    %145 = tpu.matmul %143, %144, %cst_47 {dimension_numbers = #tpu.dot_dimension_numbers<[1], [0], [0], [1], [0, 0, 1, 1], [], []>} : vector<16x384xbf16>, vector<384x384xbf16>, vector<16x384xf32> -> vector<16x384xf32>
    %c0_48 = arith.constant 0 : index
    %c0_49 = arith.constant 0 : index
    %146 = vector.load %arg4[%c0_48, %c0_49] : memref<1x384xf32, #tpu.memory_space<vmem>>, vector<1x384xf32>
    %147 = vector.broadcast %146 : vector<1x384xf32> to vector<16x384xf32>
    %148 = arith.addf %145, %147 : vector<16x384xf32>
    %149 = vector.shape_cast %148 : vector<16x384xf32> to vector<2x8x384xf32>
    %c0_50 = arith.constant 0 : index
    %c0_51 = arith.constant 0 : index
    %c0_52 = arith.constant 0 : index
    %150 = vector.load %arg5[%c0_50, %c0_51, %c0_52] : memref<2x8x384xf32, #tpu.memory_space<vmem>>, vector<2x8x384xf32>
    tpu.vector_store %arg5[%c0_50, %c0_51, %c0_52], %149 {strides = array<i32>} : memref<2x8x384xf32, #tpu.memory_space<vmem>>, vector<2x8x384xf32>,
    return
  }
  func.func @transform_0(%arg0: i32) -> (i32, i32, i32) {
    %c0_i32 = arith.constant 0 : i32
    %c0_i32_0 = arith.constant 0 : i32
    %c0_i32_1 = arith.constant 0 : i32
    return %arg0, %c0_i32, %c0_i32_0 : i32, i32, i32
  }
  func.func @transform_1(%arg0: i32) -> (i32, i32) {
    %c0_i32 = arith.constant 0 : i32
    %c0_i32_0 = arith.constant 0 : i32
    %c0_i32_1 = arith.constant 0 : i32
    return %c0_i32, %c0_i32_0 : i32, i32
  }
  func.func @transform_2(%arg0: i32) -> (i32, i32) {
    %c0_i32 = arith.constant 0 : i32
    %c0_i32_0 = arith.constant 0 : i32
    %c0_i32_1 = arith.constant 0 : i32
    return %c0_i32, %c0_i32_0 : i32, i32
  }
  func.func @transform_3(%arg0: i32) -> (i32, i32) {
    %c0_i32 = arith.constant 0 : i32
    %c0_i32_0 = arith.constant 0 : i32
    %c0_i32_1 = arith.constant 0 : i32
    return %c0_i32, %c0_i32_0 : i32, i32
  }
  func.func @transform_4(%arg0: i32) -> (i32, i32, i32) {
    %c0_i32 = arith.constant 0 : i32
    %c0_i32_0 = arith.constant 0 : i32
    %c0_i32_1 = arith.constant 0 : i32
    return %arg0, %c0_i32, %c0_i32_0 : i32, i32, i32
  }
}

</mosaic_0001>

<bundles_post_ra>
// kernel: multi_head_attention.1
= control target key start
LH: loop header
LB: loop body
LE: loop exit
PB: predicated region body
PF: predicated region fallthrough
CT: control target
= control target key end

     0   :  { %9 = vsyncpa [#allocation4], 0  ;;  %s4573_s0 = inlined_call_operand.hbm [shape: f32[2,8,384], index: 0, kind: input, shape index: {}]   ;;  %s4574_s1 = inlined_call_operand.hbm [shape: bf16[384,1152], index: 1, kind: input, shape index: {}]   ;;  %s4575_s2 = inlined_call_operand.hbm [shape: bf16[384,384], index: 2, kind: input, shape index: {}]   ;;  %s4576_s3 = inlined_call_operand.hbm [shape: f32[1,384], index: 3, kind: input, shape index: {}]   ;;  %s4577_s4 = inlined_call_operand.hbm [shape: f32[2,8,384], index: 4, kind: output, shape index: {}]  }
   0x1   :  { %10 = vsyncpa [#allocation7], 0 }
   0x2   :  { %11 = vsyncpa [#allocation10], 0  ;;  %s30_s17 = sshll.u32 %s4574_s1, 4  ;;  %s31_s17 = int_to_ptr.hbm [resolvable:$true] %s30_s17 }
   0x3   :  { %12 = vsyncpa [#allocation5], 0  ;;  %s4371_s18 = smov [#allocation6]   ;;  %s17_s22 = sshll.u32 %s4573_s0, 4  ;;  %s18_s22 = int_to_ptr.hbm [resolvable:$true] %s17_s22 }
   0x4   :  { %s32_s19 = sshll.u32 %s4371_s18, 4  ;;  %s4372_s23 = smov 576   ;;  %s33_s19 = int_to_ptr.vmem [resolvable:$true] %s32_s19 }
   0x5   :  { %s4373_s24 = smov 36   ;;  %s4374_s25 = smov [#allocation3]  }
   0x6   :  { %38 = dma.hbm_to_vmem [thread:$0]  %s31_s17, 27648, %s33_s19, [#allocation7], %s4372_s23, %s4372_s23, %s4373_s24  }
   0x7   :  { %s19_s26 = sshll.u32 %s4374_s25, 4  ;;  %s4375_s27 = smov 384   ;;  %s20_s26 = int_to_ptr.vmem [resolvable:$true] %s19_s26 }
   0x8   :  { %s4376_s28 = smov 24   ;;  %s43_s30 = sshll.u32 %s4575_s2, 4  ;;  %s44_s30 = int_to_ptr.hbm [resolvable:$true] %s43_s30 }
   0x9   :  { %25 = dma.hbm_to_vmem [thread:$0]  %s18_s22, 768, %s20_s26, [#allocation4], %s4375_s27, %s4375_s27, %s4376_s28  }
   0xa   :  { %s4377_s5 = smov [#allocation8]   ;;  %s57_s8 = sshll.u32 %s4576_s3, 4  ;;  %s58_s8 = int_to_ptr.hbm [resolvable:$true] %s57_s8 }
   0xb   :  { %s45_s0 = sshll.u32 %s4377_s5, 4  ;;  %s4378_s9 = smov 192   ;;  %s46_s0 = int_to_ptr.vmem [resolvable:$true] %s45_s0 }
   0xc   :  { %s4379_s10 = smov 12   ;;  %s4380_s11 = smov [#allocation9]  }
   0xd   :  { %51 = dma.hbm_to_vmem [thread:$0]  %s44_s30, 9216, %s46_s0, [#allocation7], %s4378_s9, %s4378_s9, %s4379_s10  }
   0xe   :  { %s59_s12 = sshll.u32 %s4380_s11, 4  ;;  %s60_s12 = int_to_ptr.vmem [resolvable:$true] %s59_s12 }
   0xf   :  { %62 = dma.hbm_to_vmem [thread:$0]  %s58_s8, 48, %s60_s12, [#allocation10]  }
  0x10   :  { %4363 = dma.done.wait [#allocation4], 768  }
  0x11   :  { %4364 = vsyncadd [#allocation4], 4294966528 }
  0x12   :  { %4365 = dma.done.wait [#allocation7], 36864  }
  0x13   :  { %4366 = vsyncadd [#allocation7], 4294930432 }
  0x14   :  { %4367 = dma.done.wait [#allocation10], 48  }
  0x15   :  { %4368 = vsyncadd [#allocation10], 4294967248  ;;  %v3016_v0 = vld [vmem:[#allocation6 + $0x1f8] sm:$0xf]  ;;  %v3987_v1 = vld [vmem:[#allocation6 + $0x218] sm:$0xf0] }
  0x16   :  { %v3304_v2 = vld [vmem:[#allocation6 + $0x438] sm:$0xf]  ;;  %v3017_v3 = vor.u32 %v3987_v1, %v3016_v0  ;;  %v4059_v4 = vld [vmem:[#allocation6 + $0x458] sm:$0xf0]  ;;  %v3018_v10 = vld [vmem:[#allocation6 + $0x21c] sm:$0xf0] }
  0x17   :  { %v3592_v5 = vld [vmem:[#allocation6 + $0x678] sm:$0xf]  ;;  %v4131_v6 = vld [vmem:[#allocation6 + $0x698] sm:$0xf0]  ;;  %v3305_v7 = vor.u32 %v4059_v4, %v3304_v2  ;;  %v2980_v11 = vld [vmem:[#allocation6 + $0x1b0] sm:$0xf] }
  0x18   :  { %v3593_v8 = vor.u32 %v4131_v6, %v3592_v5  ;;  %v3983_v9 = vld [vmem:[#allocation6 + $0x1fc] sm:$0xf]  ;;  %1433 = vmatpush.bf16.msra.mxu0 %v3017_v3  ;;  %v3978_v13 = vld [vmem:[#allocation6 + $0x1d0] sm:$0xf0]  ;;  %v3268_v14 = vld [vmem:[#allocation6 + $0x3f0] sm:$0xf] }
  0x19   :  { %v3021_v12 = vor.u32 %v3983_v9, %v3018_v10  ;;  %v4050_v15 = vld [vmem:[#allocation6 + $0x410] sm:$0xf0]  ;;  %1447 = vmatpush.bf16.msra.mxu1 %v3305_v7  ;;  %v2981_v16 = vor.u32 %v3978_v13, %v2980_v11  ;;  %v3556_v18 = vld [vmem:[#allocation6 + $0x630] sm:$0xf]  ;;  %v2982_v22 = vld [vmem:[#allocation6 + $0x1d4] sm:$0xf0] }
  0x1a   :  { %1461 = vmatpush.bf16.msra.mxu2 %v3593_v8  ;;  %v3269_v17 = vor.u32 %v4050_v15, %v3268_v14  ;;  %v4122_v19 = vld [vmem:[#allocation6 + $0x650] sm:$0xf0]  ;;  %v2944_v23 = vld [vmem:[#allocation6 + $0x168] sm:$0xf]  ;;  %v3969_v24 = vld [vmem:[#allocation6 + $0x188] sm:$0xf0] }
  0x1b   :  { %v3974_v20 = vld [vmem:[#allocation6 + $0x1b4] sm:$0xf]  ;;  %1475 = vmatpush.bf16.msra.mxu3 %v3021_v12  ;;  %v3557_v21 = vor.u32 %v4122_v19, %v3556_v18  ;;  %v3232_v26 = vld [vmem:[#allocation6 + $0x3a8] sm:$0xf]  ;;  %v4041_v27 = vld [vmem:[#allocation6 + $0x3c8] sm:$0xf0]  ;;  %v2945_v29 = vor.u32 %v3969_v24, %v2944_v23 }
  0x1c   :  { %v2985_v25 = vor.u32 %v3974_v20, %v2982_v22  ;;  %v3520_v28 = vld [vmem:[#allocation6 + $0x5e8] sm:$0xf]  ;;  %1434 = vmatpush.bf16.msra.mxu0 %v2981_v16  ;;  %v4113_v30 = vld [vmem:[#allocation6 + $0x608] sm:$0xf0]  ;;  %v2946_v32 = vld [vmem:[#allocation6 + $0x18c] sm:$0xf0]  ;;  %v3233_v33 = vor.u32 %v4041_v27, %v3232_v26 }
  0x1d   :  { %v3965_v31 = vld [vmem:[#allocation6 + $0x16c] sm:$0xf]  ;;  %1448 = vmatpush.bf16.msra.mxu1 %v3269_v17  ;;  %v3521_v34 = vor.u32 %v4113_v30, %v3520_v28  ;;  %v2908_v35 = vld [vmem:[#allocation6 + $0x120] sm:$0xf]  ;;  %v3960_v36 = vld [vmem:[#allocation6 + $0x140] sm:$0xf0] }
  0x1e   :  { %1462 = vmatpush.bf16.msra.mxu2 %v3557_v21  ;;  %v3196_v37 = vld [vmem:[#allocation6 + $0x360] sm:$0xf]  ;;  %v2949_v38 = vor.u32 %v3965_v31, %v2946_v32  ;;  %v4032_v39 = vld [vmem:[#allocation6 + $0x380] sm:$0xf0]  ;;  %v2910_v43 = vld [vmem:[#allocation6 + $0x144] sm:$0xf0]  ;;  %v2909_v44 = vor.u32 %v3960_v36, %v2908_v35 }
  0x1f   :  { %1476 = vmatpush.bf16.msra.mxu3 %v2985_v25  ;;  %v3484_v40 = vld [vmem:[#allocation6 + $0x5a0] sm:$0xf]  ;;  %v4104_v41 = vld [vmem:[#allocation6 + $0x5c0] sm:$0xf0]  ;;  %v3197_v45 = vor.u32 %v4032_v39, %v3196_v37  ;;  %v2872_v47 = vld [vmem:[#allocation6 + $0xd8] sm:$0xf] }
  0x20   :  { %v3956_v42 = vld [vmem:[#allocation6 + $0x124] sm:$0xf]  ;;  %1435 = vmatpush.bf16.msra.mxu0 %v2945_v29  ;;  %v3485_v46 = vor.u32 %v4104_v41, %v3484_v40  ;;  %v3951_v48 = vld [vmem:[#allocation6 + $0xf8] sm:$0xf0]  ;;  %v3160_v49 = vld [vmem:[#allocation6 + $0x318] sm:$0xf] }
  0x21   :  { %1449 = vmatpush.bf16.msra.mxu1 %v3233_v33  ;;  %v2913_v50 = vor.u32 %v3956_v42, %v2910_v43  ;;  %v4023_v51 = vld [vmem:[#allocation6 + $0x338] sm:$0xf0]  ;;  %v3448_v52 = vld [vmem:[#allocation6 + $0x558] sm:$0xf]  ;;  %v2874_v55 = vld [vmem:[#allocation6 + $0xfc] sm:$0xf0]  ;;  %v2873_v56 = vor.u32 %v3951_v48, %v2872_v47 }
  0x22   :  { %1463 = vmatpush.bf16.msra.mxu2 %v3521_v34  ;;  %v4095_v53 = vld [vmem:[#allocation6 + $0x578] sm:$0xf0]  ;;  %v3161_v57 = vor.u32 %v4023_v51, %v3160_v49  ;;  %v2836_v59 = vld [vmem:[#allocation6 + $0x90] sm:$0xf]  ;;  %v3942_v60 = vld [vmem:[#allocation6 + $0xb0] sm:$0xf0] }
  0x23   :  { %1477 = vmatpush.bf16.msra.mxu3 %v2949_v38  ;;  %v3947_v54 = vld [vmem:[#allocation6 + $0xdc] sm:$0xf]  ;;  %v3449_v58 = vor.u32 %v4095_v53, %v3448_v52  ;;  %v3124_v61 = vld [vmem:[#allocation6 + $0x2d0] sm:$0xf]  ;;  %v4014_v63 = vld [vmem:[#allocation6 + $0x2f0] sm:$0xf0]  ;;  %v2837_v4 = vor.u32 %v3942_v60, %v2836_v59 }
  0x24   :  { %1436 = vmatpush.bf16.msra.mxu0 %v2909_v44  ;;  %v2877_v62 = vor.u32 %v3947_v54, %v2874_v55  ;;  %v3412_v0 = vld [vmem:[#allocation6 + $0x510] sm:$0xf]  ;;  %v4086_v1 = vld [vmem:[#allocation6 + $0x530] sm:$0xf0]  ;;  %v2838_v3 = vld [vmem:[#allocation6 + $0xb4] sm:$0xf0]  ;;  %v3125_v5 = vor.u32 %v4014_v63, %v3124_v61 }
  0x25   :  { %1450 = vmatpush.bf16.msra.mxu1 %v3197_v45  ;;  %v3938_v2 = vld [vmem:[#allocation6 + $0x94] sm:$0xf]  ;;  %v3413_v6 = vor.u32 %v4086_v1, %v3412_v0  ;;  %v2800_v7 = vld [vmem:[#allocation6 + $0x48] sm:$0xf]  ;;  %v3933_v8 = vld [vmem:[#allocation6 + $0x68] sm:$0xf0] }
  0x26   :  { %1464 = vmatpush.bf16.msra.mxu2 %v3485_v46  ;;  %v3088_v9 = vld [vmem:[#allocation6 + $0x288] sm:$0xf]  ;;  %v2841_v10 = vor.u32 %v3938_v2, %v2838_v3  ;;  %v4005_v11 = vld [vmem:[#allocation6 + $0x2a8] sm:$0xf0]  ;;  %v2802_v15 = vld [vmem:[#allocation6 + $0x6c] sm:$0xf0]  ;;  %v2801_v16 = vor.u32 %v3933_v8, %v2800_v7 }
  0x27   :  { %1478 = vmatpush.bf16.msra.mxu3 %v2913_v50  ;;  %v3376_v12 = vld [vmem:[#allocation6 + $0x4c8] sm:$0xf]  ;;  %v4077_v13 = vld [vmem:[#allocation6 + $0x4e8] sm:$0xf0]  ;;  %v2764_v17 = vld [vmem:[#allocation6] sm:$0xf]  ;;  %v3089_v19 = vor.u32 %v4005_v11, %v3088_v9 }
  0x28   :  { %1437 = vmatpush.bf16.msra.mxu0 %v2873_v56  ;;  %v3929_v14 = vld [vmem:[#allocation6 + $0x4c] sm:$0xf]  ;;  %v3924_v18 = vld [vmem:[#allocation6 + $0x20] sm:$0xf0]  ;;  %v3377_v20 = vor.u32 %v4077_v13, %v3376_v12  ;;  %v3052_v21 = vld [vmem:[#allocation6 + $0x240] sm:$0xf] }
  0x29   :  { %1451 = vmatpush.bf16.msra.mxu1 %v3161_v57  ;;  %v3996_v22 = vld [vmem:[#allocation6 + $0x260] sm:$0xf0]  ;;  %v3340_v23 = vld [vmem:[#allocation6 + $0x480] sm:$0xf]  ;;  %v2805_v24 = vor.u32 %v3929_v14, %v2802_v15  ;;  %v2766_v27 = vld [vmem:[#allocation6 + $0x24] sm:$0xf0]  ;;  %v2765_v31 = vor.u32 %v3924_v18, %v2764_v17 }
  0x2a   :  { %1465 = vmatpush.bf16.msra.mxu2 %v3449_v58  ;;  %v4068_v25 = vld [vmem:[#allocation6 + $0x4a0] sm:$0xf0]  ;;  %v4055_v28 = vld [vmem:[#allocation6 + $0x43c] sm:$0xf]  ;;  %v3306_v29 = vld [vmem:[#allocation6 + $0x45c] sm:$0xf0]  ;;  %v3053_v35 = vor.u32 %v3996_v22, %v3052_v21 }
  0x2b   :  { %1479 = vmatpush.bf16.msra.mxu3 %v2877_v62  ;;  %v3920_v26 = vld [vmem:[#allocation6 + $0x4] sm:$0xf]  ;;  %v4127_v30 = vld [vmem:[#allocation6 + $0x67c] sm:$0xf]  ;;  %v3594_v32 = vld [vmem:[#allocation6 + $0x69c] sm:$0xf0]  ;;  %v3341_v36 = vor.u32 %v4068_v25, %v3340_v23  ;;  %v3309_v40 = vor.u32 %v4055_v28, %v3306_v29 }
  0x2c   :  { %1438 = vmatpush.bf16.msra.mxu0 %v2837_v4  ;;  %v3024_v33 = vld [vmem:[#allocation6 + $0x200] sm:$0xf]  ;;  %v3988_v34 = vld [vmem:[#allocation6 + $0x220] sm:$0xf0]  ;;  %v2769_v39 = vor.u32 %v3920_v26, %v2766_v27  ;;  %v4046_v41 = vld [vmem:[#allocation6 + $0x3f4] sm:$0xf]  ;;  %v3597_v42 = vor.u32 %v4127_v30, %v3594_v32 }
  0x2d   :  { %1452 = vmatpush.bf16.msra.mxu1 %v3125_v5  ;;  %v3312_v37 = vld [vmem:[#allocation6 + $0x440] sm:$0xf]  ;;  %v4060_v38 = vld [vmem:[#allocation6 + $0x460] sm:$0xf0]  ;;  %v3025_v43 = vor.u32 %v3988_v34, %v3024_v33  ;;  %v3270_v44 = vld [vmem:[#allocation6 + $0x414] sm:$0xf0] }
  0x2e   :  { %1466 = vmatpush.bf16.msra.mxu2 %v3413_v6  ;;  %v4118_v45 = vld [vmem:[#allocation6 + $0x634] sm:$0xf]  ;;  %v3558_v46 = vld [vmem:[#allocation6 + $0x654] sm:$0xf0]  ;;  %v3313_v47 = vor.u32 %v4060_v38, %v3312_v37  ;;  %v3979_v49 = vld [vmem:[#allocation6 + $0x1d8] sm:$0xf0]  ;;  %v3273_v54 = vor.u32 %v4046_v41, %v3270_v44 }
  0x2f   :  { %1480 = vmatpush.bf16.msra.mxu3 %v2841_v10  ;;  %v2988_v48 = vld [vmem:[#allocation6 + $0x1b8] sm:$0xf]  ;;  %v4051_v51 = vld [vmem:[#allocation6 + $0x418] sm:$0xf0]  ;;  %v80_v52 = vld [vmem:[#allocation3] sm:$0xff]  ;;  %v3561_v59 = vor.u32 %v4118_v45, %v3558_v46  ;;  %vm1849_vm0 = vcmask 1043456  }
  0x30   :  { %1439 = vmatpush.bf16.msra.mxu0 %v2801_v16  ;;  %v3276_v50 = vld [vmem:[#allocation6 + $0x3f8] sm:$0xf]  ;;  %v83_v53 = vld [vmem:[#allocation3 + $0x18] sm:$0xff]  ;;  %v3234_v56 = vld [vmem:[#allocation6 + $0x3cc] sm:$0xf0]  ;;  %v2989_v60 = vor.u32 %v3979_v49, %v2988_v48  ;;  %vm1832_vm2 = vcmask 64512  }
  0x31   :  { %1453 = vmatpush.bf16.msra.mxu1 %v3089_v19  ;;  %v4037_v55 = vld [vmem:[#allocation6 + $0x3ac] sm:$0xf]  ;;  %v4422_v58 = vpack.c.bf16 %v83_v53, %v80_v52  ;;  %v3522_v61 = vld [vmem:[#allocation6 + $0x60c] sm:$0xf0]  ;;  %v3970_v63 = vld [vmem:[#allocation6 + $0x190] sm:$0xf0]  ;;  %v3277_v0 = vor.u32 %v4051_v51, %v3276_v50 }
  0x32   :  { %1467 = vmatpush.bf16.msra.mxu2 %v3377_v20  ;;  %v4109_v57 = vld [vmem:[#allocation6 + $0x5ec] sm:$0xf]  ;;  %v2952_v62 = vld [vmem:[#allocation6 + $0x170] sm:$0xf]  ;;  %v81_v2 = vld [vmem:[#allocation3 + $0x8] sm:$0xff]  ;;  %v3237_v8 = vor.u32 %v4037_v55, %v3234_v56  ;;  %s4381_s2 = smov [#allocation11]  }
  0x33   :  { %1481 = vmatpush.bf16.msra.mxu3 %v2805_v24  ;;  %v3240_v1 = vld [vmem:[#allocation6 + $0x3b0] sm:$0xf]  ;;  %v4042_v4 = vld [vmem:[#allocation6 + $0x3d0] sm:$0xf0]  ;;  %v82_v6 = vld [vmem:[#allocation3 + $0x10] sm:$0xff]  ;;  %v3525_v10 = vor.u32 %v4109_v57, %v3522_v61  ;;  %v2953_v11 = vor.u32 %v3970_v63, %v2952_v62  ;;  %s2745_s3 = sshll.u32 %s4381_s2, 4  ;;  %s2746_s3 = int_to_ptr.vmem [resolvable:$true] %s2745_s3 }
  0x34   :  { %1440 = vmatpush.bf16.msra.mxu0 %v2765_v31  ;;  %v84_v3 = vld [vmem:[#allocation3 + $0x20] sm:$0xff]  ;;  %v85_v7 = vld [vmem:[#allocation3 + $0x28] sm:$0xff]  ;;  %v4028_v12 = vld [vmem:[#allocation6 + $0x364] sm:$0xf]  ;;  %v3241_v15 = vor.u32 %v4042_v4, %v3240_v1  ;;  %s2747_s15 = sshll.u32 %s4577_s4, 4  ;;  %s2748_s15 = int_to_ptr.hbm [resolvable:$true] %s2747_s15 }
  0x35   :  { %1454 = vmatpush.bf16.msra.mxu1 %v3053_v35  ;;  %v4425_v5 = vpack.c.bf16 %v84_v3, %v81_v2  ;;  %v4428_v9 = vpack.c.bf16 %v85_v7, %v82_v6  ;;  %v3198_v13 = vld [vmem:[#allocation6 + $0x384] sm:$0xf0]  ;;  %v4100_v14 = vld [vmem:[#allocation6 + $0x5a4] sm:$0xf]  ;;  %v3961_v18 = vld [vmem:[#allocation6 + $0x148] sm:$0xf0] }
  0x36   :  { %1468 = vmatpush.bf16.msra.mxu2 %v3341_v36  ;;  %v3486_v16 = vld [vmem:[#allocation6 + $0x5c4] sm:$0xf0]  ;;  %v4033_v20 = vld [vmem:[#allocation6 + $0x388] sm:$0xf0]  ;;  %v3201_v21 = vor.u32 %v4028_v12, %v3198_v13  ;;  %v4019_v24 = vld [vmem:[#allocation6 + $0x31c] sm:$0xf] }
  0x37   :  { %1482 = vmatpush.bf16.msra.mxu3 %v2769_v39  ;;  %1441 = vmatmul.bf16.vlgmr.msra.gmra.mxu0 %v4422_v58  ;;  %v2916_v17 = vld [vmem:[#allocation6 + $0x128] sm:$0xf]  ;;  %v3489_v22 = vor.u32 %v4100_v14, %v3486_v16  ;;  %v3162_v25 = vld [vmem:[#allocation6 + $0x33c] sm:$0xf0]  ;;  %v4091_v26 = vld [vmem:[#allocation6 + $0x55c] sm:$0xf] }
  0x38   :  { %1489 = vmatpush.bf16.msrb.mxu0 %v3309_v40  ;;  %1455 = vmatmul.bf16.vlgmr.msra.gmra.mxu1 %v4425_v5  ;;  %v3204_v19 = vld [vmem:[#allocation6 + $0x368] sm:$0xf]  ;;  %v2917_v23 = vor.u32 %v3961_v18, %v2916_v17  ;;  %v3450_v28 = vld [vmem:[#allocation6 + $0x57c] sm:$0xf0]  ;;  %v3952_v30 = vld [vmem:[#allocation6 + $0x100] sm:$0xf0]  ;;  %v3165_v33 = vor.u32 %v4019_v24, %v3162_v25 }
  0x39   :  { %1503 = vmatpush.bf16.msrb.mxu1 %v3597_v42  ;;  %1469 = vmatmul.bf16.vlgmr.msra.gmra.mxu2 %v4428_v9  ;;  %v3205_v27 = vor.u32 %v4033_v20, %v3204_v19  ;;  %v2880_v29 = vld [vmem:[#allocation6 + $0xe0] sm:$0xf]  ;;  %v4024_v32 = vld [vmem:[#allocation6 + $0x340] sm:$0xf0]  ;;  %v3453_v34 = vor.u32 %v4091_v26, %v3450_v28  ;;  %v4010_v36 = vld [vmem:[#allocation6 + $0x2d4] sm:$0xf] }
  0x3a   :  { %1517 = vmatpush.bf16.msrb.mxu2 %v3025_v43  ;;  %1483 = vmatmul.bf16.vlgmr.msra.gmra.mxu3 %v4422_v58  ;;  %v3168_v31 = vld [vmem:[#allocation6 + $0x320] sm:$0xf]  ;;  %v2881_v35 = vor.u32 %v3952_v30, %v2880_v29  ;;  %v3126_v37 = vld [vmem:[#allocation6 + $0x2f4] sm:$0xf0]  ;;  %v4082_v38 = vld [vmem:[#allocation6 + $0x514] sm:$0xf] }
  0x3b   :  { %1531 = vmatpush.bf16.msrb.mxu3 %v3313_v47  ;;  %v3169_v39 = vor.u32 %v4024_v32, %v3168_v31  ;;  %v3414_v40 = vld [vmem:[#allocation6 + $0x534] sm:$0xf0]  ;;  %v3943_v42 = vld [vmem:[#allocation6 + $0xb8] sm:$0xf0]  ;;  %v3129_v45 = vor.u32 %v4010_v36, %v3126_v37  ;;  %v4001_v48 = vld [vmem:[#allocation6 + $0x28c] sm:$0xf] }
  0x3c   :  { %1490 = vmatpush.bf16.msrb.mxu0 %v3273_v54  ;;  %v2844_v41 = vld [vmem:[#allocation6 + $0x98] sm:$0xf]  ;;  %v4015_v44 = vld [vmem:[#allocation6 + $0x2f8] sm:$0xf0]  ;;  %v3417_v46 = vor.u32 %v4082_v38, %v3414_v40  ;;  %v3090_v49 = vld [vmem:[#allocation6 + $0x2ac] sm:$0xf0] }
  0x3d   :  { %1504 = vmatpush.bf16.msrb.mxu1 %v3561_v59  ;;  %v3132_v43 = vld [vmem:[#allocation6 + $0x2d8] sm:$0xf]  ;;  %v2845_v47 = vor.u32 %v3943_v42, %v2844_v41  ;;  %v4073_v50 = vld [vmem:[#allocation6 + $0x4cc] sm:$0xf]  ;;  %v3378_v52 = vld [vmem:[#allocation6 + $0x4ec] sm:$0xf0]  ;;  %v3093_v57 = vor.u32 %v4001_v48, %v3090_v49 }
  0x3e   :  { %1518 = vmatpush.bf16.msrb.mxu2 %v2989_v60  ;;  %v3133_v51 = vor.u32 %v4015_v44, %v3132_v43  ;;  %v2808_v53 = vld [vmem:[#allocation6 + $0x50] sm:$0xf]  ;;  %v3934_v54 = vld [vmem:[#allocation6 + $0x70] sm:$0xf0]  ;;  %v3992_v59 = vld [vmem:[#allocation6 + $0x244] sm:$0xf]  ;;  %v3381_v61 = vor.u32 %v4073_v50, %v3378_v52 }
  0x3f   :  { %1532 = vmatpush.bf16.msrb.mxu3 %v3277_v0  ;;  %v3096_v55 = vld [vmem:[#allocation6 + $0x290] sm:$0xf]  ;;  %v4006_v56 = vld [vmem:[#allocation6 + $0x2b0] sm:$0xf0]  ;;  %v3054_v60 = vld [vmem:[#allocation6 + $0x264] sm:$0xf0]  ;;  %v2809_v62 = vor.u32 %v3934_v54, %v2808_v53 }
  0x40   :  { %1491 = vmatpush.bf16.msrb.mxu0 %v3237_v8  ;;  %v4064_v63 = vld [vmem:[#allocation6 + $0x484] sm:$0xf]  ;;  %v3342_v0 = vld [vmem:[#allocation6 + $0x4a4] sm:$0xf0]  ;;  %v3097_v2 = vor.u32 %v4006_v56, %v3096_v55  ;;  %v3925_v3 = vld [vmem:[#allocation6 + $0x28] sm:$0xf0] }
  0x41   :  { %1505 = vmatpush.bf16.msrb.mxu1 %v3525_v10  ;;  %v2772_v1 = vld [vmem:[#allocation6 + $0x8] sm:$0xf]  ;;  %v3997_v6 = vld [vmem:[#allocation6 + $0x268] sm:$0xf0]  ;;  %v3600_v7 = vld [vmem:[#allocation6 + $0x680] sm:$0xf] }
  0x42   :  { %1519 = vmatpush.bf16.msrb.mxu2 %v2953_v11  ;;  %v3060_v4 = vld [vmem:[#allocation6 + $0x248] sm:$0xf]  ;;  %v4132_v8 = vld [vmem:[#allocation6 + $0x6a0] sm:$0xf0]  ;;  %v3057_v11 = vor.u32 %v3992_v59, %v3054_v60  ;;  %v2773_v16 = vor.u32 %v3925_v3, %v2772_v1  ;;  %v4123_v24 = vld [vmem:[#allocation6 + $0x658] sm:$0xf0] }
  0x43   :  { %1533 = vmatpush.bf16.msrb.mxu3 %v3241_v15  ;;  %v3984_v10 = vld [vmem:[#allocation6 + $0x204] sm:$0xf]  ;;  %v3026_v12 = vld [vmem:[#allocation6 + $0x224] sm:$0xf0]  ;;  %v3345_v15 = vor.u32 %v4064_v63, %v3342_v0  ;;  %v3061_v19 = vor.u32 %v3997_v6, %v3060_v4  ;;  %v3601_v20 = vor.u32 %v4132_v8, %v3600_v7  ;;  %v3975_v25 = vld [vmem:[#allocation6 + $0x1bc] sm:$0xf] }
  0x44   :  { %1492 = vmatpush.bf16.msrb.mxu0 %v3201_v21  ;;  %v4056_v13 = vld [vmem:[#allocation6 + $0x444] sm:$0xf]  ;;  %v3314_v14 = vld [vmem:[#allocation6 + $0x464] sm:$0xf0]  ;;  %v3029_v21 = vor.u32 %v3984_v10, %v3026_v12  ;;  %v4047_v28 = vld [vmem:[#allocation6 + $0x3fc] sm:$0xf] }
  0x45   :  { %1506 = vmatpush.bf16.msrb.mxu1 %v3489_v22  ;;  %v4128_v17 = vld [vmem:[#allocation6 + $0x684] sm:$0xf]  ;;  %v3602_v18 = vld [vmem:[#allocation6 + $0x6a4] sm:$0xf0]  ;;  %v3317_v22 = vor.u32 %v4056_v13, %v3314_v14  ;;  %v3278_v29 = vld [vmem:[#allocation6 + $0x41c] sm:$0xf0] }
  0x46   :  { %1520 = vmatpush.bf16.msrb.mxu2 %v2917_v23  ;;  %v3564_v23 = vld [vmem:[#allocation6 + $0x638] sm:$0xf]  ;;  %v3605_v26 = vor.u32 %v4128_v17, %v3602_v18  ;;  %v4119_v30 = vld [vmem:[#allocation6 + $0x63c] sm:$0xf]  ;;  %v3566_v31 = vld [vmem:[#allocation6 + $0x65c] sm:$0xf0] }
  0x47   :  { %1534 = vmatpush.bf16.msrb.mxu3 %v3205_v27  ;;  %v2990_v27 = vld [vmem:[#allocation6 + $0x1dc] sm:$0xf0]  ;;  %v3565_v32 = vor.u32 %v4123_v24, %v3564_v23  ;;  %v4114_v36 = vld [vmem:[#allocation6 + $0x610] sm:$0xf0]  ;;  %v3569_v38 = vor.u32 %v4119_v30, %v3566_v31  ;;  %v3242_v41 = vld [vmem:[#allocation6 + $0x3d4] sm:$0xf0] }
  0x48   :  { %1493 = vmatpush.bf16.msrb.mxu0 %v3165_v33  ;;  %v2993_v33 = vor.u32 %v3975_v25, %v2990_v27  ;;  %v3966_v37 = vld [vmem:[#allocation6 + $0x174] sm:$0xf]  ;;  %v3530_v43 = vld [vmem:[#allocation6 + $0x614] sm:$0xf0]  ;;  %v4105_v48 = vld [vmem:[#allocation6 + $0x5c8] sm:$0xf0] }
  0x49   :  { %1507 = vmatpush.bf16.msrb.mxu1 %v3453_v34  ;;  %v3281_v34 = vor.u32 %v4047_v28, %v3278_v29  ;;  %v4038_v40 = vld [vmem:[#allocation6 + $0x3b4] sm:$0xf]  ;;  %v3957_v49 = vld [vmem:[#allocation6 + $0x12c] sm:$0xf]  ;;  %v3206_v53 = vld [vmem:[#allocation6 + $0x38c] sm:$0xf0] }
  0x4a   :  { %1521 = vmatpush.bf16.msrb.mxu2 %v2881_v35  ;;  %v3528_v35 = vld [vmem:[#allocation6 + $0x5f0] sm:$0xf]  ;;  %v4110_v42 = vld [vmem:[#allocation6 + $0x5f4] sm:$0xf]  ;;  %v4029_v52 = vld [vmem:[#allocation6 + $0x36c] sm:$0xf] }
  0x4b   :  { %1535 = vmatpush.bf16.msrb.mxu3 %v3169_v39  ;;  %v2954_v39 = vld [vmem:[#allocation6 + $0x194] sm:$0xf0]  ;;  %v3529_v44 = vor.u32 %v4114_v36, %v3528_v35  ;;  %v3533_v50 = vor.u32 %v4110_v42, %v3530_v43  ;;  %v4101_v54 = vld [vmem:[#allocation6 + $0x5ac] sm:$0xf]  ;;  %v3494_v55 = vld [vmem:[#allocation6 + $0x5cc] sm:$0xf0]  ;;  %v3209_v59 = vor.u32 %v4029_v52, %v3206_v53 }
  0x4c   :  { %1494 = vmatpush.bf16.msrb.mxu0 %v3129_v45  ;;  %v2957_v45 = vor.u32 %v3966_v37, %v2954_v39  ;;  %v3456_v60 = vld [vmem:[#allocation6 + $0x560] sm:$0xf]  ;;  %v3497_v63 = vor.u32 %v4101_v54, %v3494_v55  ;;  %v2882_v0 = vld [vmem:[#allocation6 + $0x104] sm:$0xf0]  ;;  %v4020_v1 = vld [vmem:[#allocation6 + $0x324] sm:$0xf] }
  0x4d   :  { %1508 = vmatpush.bf16.msrb.mxu1 %v3417_v46  ;;  %v3245_v46 = vor.u32 %v4038_v40, %v3242_v41  ;;  %v4092_v3 = vld [vmem:[#allocation6 + $0x564] sm:$0xf]  ;;  %v3458_v4 = vld [vmem:[#allocation6 + $0x584] sm:$0xf0]  ;;  %v3420_v10 = vld [vmem:[#allocation6 + $0x518] sm:$0xf] }
  0x4e   :  { %1522 = vmatpush.bf16.msrb.mxu2 %v2845_v47  ;;  %v3492_v47 = vld [vmem:[#allocation6 + $0x5a8] sm:$0xf]  ;;  %v3939_v12 = vld [vmem:[#allocation6 + $0x9c] sm:$0xf]  ;;  %v3461_v13 = vor.u32 %v4092_v3, %v3458_v4  ;;  %v2846_v14 = vld [vmem:[#allocation6 + $0xbc] sm:$0xf0] }
  0x4f   :  { %1536 = vmatpush.bf16.msrb.mxu3 %v3133_v51  ;;  %v2918_v51 = vld [vmem:[#allocation6 + $0x14c] sm:$0xf0]  ;;  %v3493_v56 = vor.u32 %v4105_v48, %v3492_v47  ;;  %v4083_v17 = vld [vmem:[#allocation6 + $0x51c] sm:$0xf]  ;;  %v3422_v18 = vld [vmem:[#allocation6 + $0x53c] sm:$0xf0] }
  0x50   :  { %1495 = vmatpush.bf16.msrb.mxu0 %v3093_v57  ;;  %v2921_v57 = vor.u32 %v3957_v49, %v2918_v51  ;;  %v4078_v23 = vld [vmem:[#allocation6 + $0x4f0] sm:$0xf0]  ;;  %v3425_v25 = vor.u32 %v4083_v17, %v3422_v18  ;;  %v3098_v28 = vld [vmem:[#allocation6 + $0x2b4] sm:$0xf0]  ;;  %v4069_v35 = vld [vmem:[#allocation6 + $0x4a8] sm:$0xf0] }
  0x51   :  { %1509 = vmatpush.bf16.msrb.mxu1 %v3381_v61  ;;  %v4096_v61 = vld [vmem:[#allocation6 + $0x580] sm:$0xf0]  ;;  %v3930_v24 = vld [vmem:[#allocation6 + $0x54] sm:$0xf]  ;;  %v3386_v30 = vld [vmem:[#allocation6 + $0x4f4] sm:$0xf0] }
  0x52   :  { %1523 = vmatpush.bf16.msrb.mxu2 %v2809_v62  ;;  %v3948_v62 = vld [vmem:[#allocation6 + $0xe4] sm:$0xf]  ;;  %v3457_v6 = vor.u32 %v4096_v61, %v3456_v60  ;;  %v4002_v27 = vld [vmem:[#allocation6 + $0x294] sm:$0xf]  ;;  %v3921_v36 = vld [vmem:[#allocation6 + $0xc] sm:$0xf] }
  0x53   :  { %1537 = vmatpush.bf16.msrb.mxu3 %v3097_v2  ;;  %v3170_v2 = vld [vmem:[#allocation6 + $0x344] sm:$0xf0]  ;;  %v2885_v7 = vor.u32 %v3948_v62, %v2882_v0  ;;  %v4074_v29 = vld [vmem:[#allocation6 + $0x4d4] sm:$0xf]  ;;  %v2774_v37 = vld [vmem:[#allocation6 + $0x2c] sm:$0xf0] }
  0x54   :  { %1496 = vmatpush.bf16.msrb.mxu0 %v3057_v11  ;;  %v3173_v8 = vor.u32 %v4020_v1, %v3170_v2  ;;  %v4087_v11 = vld [vmem:[#allocation6 + $0x538] sm:$0xf0]  ;;  %v3993_v39 = vld [vmem:[#allocation6 + $0x24c] sm:$0xf]  ;;  %v3062_v40 = vld [vmem:[#allocation6 + $0x26c] sm:$0xf0]  ;;  %v2777_v48 = vor.u32 %v3921_v36, %v2774_v37 }
  0x55   :  { %1510 = vmatpush.bf16.msrb.mxu1 %v3345_v15  ;;  %v4011_v15 = vld [vmem:[#allocation6 + $0x2dc] sm:$0xf]  ;;  %v4065_v41 = vld [vmem:[#allocation6 + $0x48c] sm:$0xf]  ;;  %v3350_v42 = vld [vmem:[#allocation6 + $0x4ac] sm:$0xf0]  ;;  %v3065_v49 = vor.u32 %v3993_v39, %v3062_v40 }
  0x56   :  { %1524 = vmatpush.bf16.msrb.mxu2 %v2773_v16  ;;  %v3134_v16 = vld [vmem:[#allocation6 + $0x2fc] sm:$0xf0]  ;;  %v3032_v43 = vld [vmem:[#allocation6 + $0x208] sm:$0xf]  ;;  %v4133_v47 = vld [vmem:[#allocation6 + $0x6a8] sm:$0xf0] }
  0x57   :  { %1538 = vmatpush.bf16.msrb.mxu3 %v3061_v19  ;;  %1497 = vmatmul.bf16.vlgmr.msrb.gmra.mxu0 %v4425_v5  ;;  %v3421_v19 = vor.u32 %v4087_v11, %v3420_v10  ;;  %v3320_v52 = vld [vmem:[#allocation6 + $0x448] sm:$0xf]  ;;  %v4061_v53 = vld [vmem:[#allocation6 + $0x468] sm:$0xf0]  ;;  %v2996_v54 = vld [vmem:[#allocation6 + $0x1c0] sm:$0xf] }
  0x58   :  { %1545 = vmatpush.bf16.msra.mxu0 %v3601_v20  ;;  %1511 = vmatmul.bf16.vlgmr.msrb.gmra.mxu1 %v4428_v9  ;;  %v2849_v20 = vor.u32 %v3939_v12, %v2846_v14  ;;  %v3572_v60 = vld [vmem:[#allocation6 + $0x640] sm:$0xf]  ;;  %v4124_v61 = vld [vmem:[#allocation6 + $0x660] sm:$0xf0]  ;;  %v3321_v62 = vor.u32 %v4061_v53, %v3320_v52  ;;  %v2960_v2 = vld [vmem:[#allocation6 + $0x178] sm:$0xf] }
  0x59   :  { %1559 = vmatpush.bf16.msra.mxu1 %v3029_v21  ;;  %1525 = vmatmul.bf16.vlgmr.msrb.gmra.mxu2 %v4422_v58  ;;  %v3137_v21 = vor.u32 %v4011_v15, %v3134_v16  ;;  %v3284_v0 = vld [vmem:[#allocation6 + $0x400] sm:$0xf]  ;;  %v4052_v1 = vld [vmem:[#allocation6 + $0x420] sm:$0xf0]  ;;  %v3573_v4 = vor.u32 %v4124_v61, %v3572_v60  ;;  %v3536_v10 = vld [vmem:[#allocation6 + $0x5f8] sm:$0xf] }
  0x5a   :  { %1573 = vmatpush.bf16.msra.mxu2 %v3317_v22  ;;  %1539 = vmatmul.bf16.vlgmr.msrb.gmra.mxu3 %v4425_v5  ;;  %v3384_v22 = vld [vmem:[#allocation6 + $0x4d0] sm:$0xf]  ;;  %v4115_v11 = vld [vmem:[#allocation6 + $0x618] sm:$0xf0]  ;;  %v3285_v12 = vor.u32 %v4052_v1, %v3284_v0  ;;  %v3248_v14 = vld [vmem:[#allocation6 + $0x3b8] sm:$0xf] }
  0x5b   :  { %1587 = vmatpush.bf16.msra.mxu3 %v3605_v26  ;;  %v2810_v26 = vld [vmem:[#allocation6 + $0x74] sm:$0xf0]  ;;  %v3385_v31 = vor.u32 %v4078_v23, %v3384_v22  ;;  %v4043_v15 = vld [vmem:[#allocation6 + $0x3d8] sm:$0xf0]  ;;  %v2924_v16 = vld [vmem:[#allocation6 + $0x130] sm:$0xf]  ;;  %v3537_v18 = vor.u32 %v4115_v11, %v3536_v10 }
  0x5c   :  { %1546 = vmatpush.bf16.msra.mxu0 %v3565_v32  ;;  %v3348_v32 = vld [vmem:[#allocation6 + $0x488] sm:$0xf]  ;;  %v3500_v22 = vld [vmem:[#allocation6 + $0x5b0] sm:$0xf]  ;;  %v4106_v23 = vld [vmem:[#allocation6 + $0x5d0] sm:$0xf0] }
  0x5d   :  { %1560 = vmatpush.bf16.msra.mxu1 %v2993_v33  ;;  %v2813_v33 = vor.u32 %v3930_v24, %v2810_v26  ;;  %v3249_v24 = vor.u32 %v4043_v15, %v3248_v14  ;;  %v3212_v26 = vld [vmem:[#allocation6 + $0x370] sm:$0xf]  ;;  %v4025_v39 = vld [vmem:[#allocation6 + $0x348] sm:$0xf0]  ;;  %v2852_v40 = vld [vmem:[#allocation6 + $0xa0] sm:$0xf] }
  0x5e   :  { %1574 = vmatpush.bf16.msra.mxu2 %v3281_v34  ;;  %v3101_v34 = vor.u32 %v4002_v27, %v3098_v28  ;;  %v4034_v27 = vld [vmem:[#allocation6 + $0x390] sm:$0xf0]  ;;  %v2888_v28 = vld [vmem:[#allocation6 + $0xe8] sm:$0xf]  ;;  %v2816_v52 = vld [vmem:[#allocation6 + $0x58] sm:$0xf] }
  0x5f   :  { %1588 = vmatpush.bf16.msra.mxu3 %v3569_v38  ;;  %v3389_v38 = vor.u32 %v4074_v29, %v3386_v30  ;;  %v3501_v30 = vor.u32 %v4106_v23, %v3500_v22  ;;  %v3213_v36 = vor.u32 %v4034_v27, %v3212_v26  ;;  %v4079_v60 = vld [vmem:[#allocation6 + $0x4f8] sm:$0xf0]  ;;  %v2780_v1 = vld [vmem:[#allocation6 + $0x10] sm:$0xf]  ;;  %v4070_v10 = vld [vmem:[#allocation6 + $0x4b0] sm:$0xf0] }
  0x60   :  { %1547 = vmatpush.bf16.msra.mxu0 %v3529_v44  ;;  %v3989_v44 = vld [vmem:[#allocation6 + $0x228] sm:$0xf0]  ;;  %v4007_v0 = vld [vmem:[#allocation6 + $0x2b8] sm:$0xf0]  ;;  %v3040_v14 = vld [vmem:[#allocation6 + $0x210] sm:$0xf] }
  0x61   :  { %1561 = vmatpush.bf16.msra.mxu1 %v2957_v45  ;;  %v3349_v45 = vor.u32 %v4069_v35, %v3348_v32  ;;  %v3033_v51 = vor.u32 %v3989_v44, %v3032_v43  ;;  %v3958_v32 = vld [vmem:[#allocation6 + $0x134] sm:$0xf]  ;;  %v4097_v35 = vld [vmem:[#allocation6 + $0x588] sm:$0xf0]  ;;  %v3944_v43 = vld [vmem:[#allocation6 + $0xc0] sm:$0xf0] }
  0x62   :  { %1575 = vmatpush.bf16.msra.mxu2 %v3245_v46  ;;  %v3608_v46 = vld [vmem:[#allocation6 + $0x688] sm:$0xf]  ;;  %v3949_v44 = vld [vmem:[#allocation6 + $0xec] sm:$0xf]  ;;  %v3990_v15 = vld [vmem:[#allocation6 + $0x230] sm:$0xf0] }
  0x63   :  { %1589 = vmatpush.bf16.msra.mxu3 %v3533_v50  ;;  %v3353_v50 = vor.u32 %v4065_v41, %v3350_v42  ;;  %v3609_v55 = vor.u32 %v4133_v47, %v3608_v46  ;;  %v3428_v46 = vld [vmem:[#allocation6 + $0x520] sm:$0xf]  ;;  %v4088_v47 = vld [vmem:[#allocation6 + $0x540] sm:$0xf0]  ;;  %v4057_v11 = vld [vmem:[#allocation6 + $0x44c] sm:$0xf] }
  0x64   :  { %1548 = vmatpush.bf16.msra.mxu0 %v3493_v56  ;;  %v3980_v56 = vld [vmem:[#allocation6 + $0x1e0] sm:$0xf0]  ;;  %v4129_v22 = vld [vmem:[#allocation6 + $0x68c] sm:$0xf]  ;;  %v3610_v23 = vld [vmem:[#allocation6 + $0x6ac] sm:$0xf0] }
  0x65   :  { %1562 = vmatpush.bf16.msra.mxu1 %v2921_v57  ;;  %v3985_v57 = vld [vmem:[#allocation6 + $0x20c] sm:$0xf]  ;;  %v3922_v26 = vld [vmem:[#allocation6 + $0x14] sm:$0xf]  ;;  %v2782_v27 = vld [vmem:[#allocation6 + $0x34] sm:$0xf0] }
  0x66   :  { %1576 = vmatpush.bf16.msra.mxu2 %v3209_v59  ;;  %v3034_v59 = vld [vmem:[#allocation6 + $0x22c] sm:$0xf0] }
  0x67   :  { %1590 = vmatpush.bf16.msra.mxu3 %v3497_v63  ;;  %v2997_v63 = vor.u32 %v3980_v56, %v2996_v54  ;;  %v3037_v3 = vor.u32 %v3985_v57, %v3034_v59  ;;  %v3429_v54 = vor.u32 %v4088_v47, %v3428_v46  ;;  %v3940_v56 = vld [vmem:[#allocation6 + $0xa4] sm:$0xf]  ;;  %v2854_v57 = vld [vmem:[#allocation6 + $0xc4] sm:$0xf0]  ;;  %v3392_v59 = vld [vmem:[#allocation6 + $0x4d8] sm:$0xf] }
  0x68   :  { %1549 = vmatpush.bf16.msra.mxu0 %v3457_v6  ;;  %v3971_v6 = vld [vmem:[#allocation6 + $0x198] sm:$0xf0]  ;;  %v2968_v46 = vld [vmem:[#allocation6 + $0x180] sm:$0xf]  ;;  %v3972_v47 = vld [vmem:[#allocation6 + $0x1a0] sm:$0xf0] }
  0x69   :  { %1563 = vmatpush.bf16.msra.mxu1 %v2885_v7  ;;  %v3976_v7 = vld [vmem:[#allocation6 + $0x1c4] sm:$0xf] }
  0x6a   :  { %1577 = vmatpush.bf16.msra.mxu2 %v3173_v8  ;;  %v2998_v8 = vld [vmem:[#allocation6 + $0x1e4] sm:$0xf0] }
  0x6b   :  { %1591 = vmatpush.bf16.msra.mxu3 %v3461_v13  ;;  %v2961_v13 = vor.u32 %v3971_v6, %v2960_v2  ;;  %v3001_v17 = vor.u32 %v3976_v7, %v2998_v8  ;;  %v3926_v2 = vld [vmem:[#allocation6 + $0x30] sm:$0xf0]  ;;  %v3356_v6 = vld [vmem:[#allocation6 + $0x490] sm:$0xf]  ;;  %v3931_v7 = vld [vmem:[#allocation6 + $0x5c] sm:$0xf] }
  0x6c   :  { %1550 = vmatpush.bf16.msra.mxu0 %v3421_v19  ;;  %v3962_v19 = vld [vmem:[#allocation6 + $0x150] sm:$0xf0]  ;;  %v2818_v8 = vld [vmem:[#allocation6 + $0x7c] sm:$0xf0] }
  0x6d   :  { %1564 = vmatpush.bf16.msra.mxu1 %v2849_v20  ;;  %v3967_v20 = vld [vmem:[#allocation6 + $0x17c] sm:$0xf] }
  0x6e   :  { %1578 = vmatpush.bf16.msra.mxu2 %v3137_v21  ;;  %v2962_v21 = vld [vmem:[#allocation6 + $0x19c] sm:$0xf0] }
  0x6f   :  { %1592 = vmatpush.bf16.msra.mxu3 %v3425_v25  ;;  %v2925_v25 = vor.u32 %v3962_v19, %v2924_v16  ;;  %v2965_v29 = vor.u32 %v3967_v20, %v2962_v21  ;;  %v2781_v16 = vor.u32 %v3926_v2, %v2780_v1  ;;  %v2821_v19 = vor.u32 %v3931_v7, %v2818_v8  ;;  %v3178_v1 = vld [vmem:[#allocation6 + $0x34c] sm:$0xf0] }
  0x70   :  { %1551 = vmatpush.bf16.msra.mxu0 %v3385_v31  ;;  %v3953_v31 = vld [vmem:[#allocation6 + $0x108] sm:$0xf0]  ;;  %v3357_v20 = vor.u32 %v4070_v10, %v3356_v6  ;;  %v4035_v6 = vld [vmem:[#allocation6 + $0x398] sm:$0xf0]  ;;  %v2896_v8 = vld [vmem:[#allocation6 + $0xf0] sm:$0xf] }
  0x71   :  { %1565 = vmatpush.bf16.msra.mxu1 %v2813_v33  ;;  %v2926_v33 = vld [vmem:[#allocation6 + $0x154] sm:$0xf0]  ;;  %v2889_v37 = vor.u32 %v3953_v31, %v2888_v28  ;;  %v3041_v28 = vor.u32 %v3990_v15, %v3040_v14  ;;  %v4062_v31 = vld [vmem:[#allocation6 + $0x470] sm:$0xf0]  ;;  %v4012_v14 = vld [vmem:[#allocation6 + $0x2e4] sm:$0xf] }
  0x72   :  { %1579 = vmatpush.bf16.msra.mxu2 %v3101_v34  ;;  %v3464_v34 = vld [vmem:[#allocation6 + $0x568] sm:$0xf]  ;;  %v2929_v41 = vor.u32 %v3958_v32, %v2926_v33  ;;  %v3613_v32 = vor.u32 %v4129_v22, %v3610_v23  ;;  %v3954_v10 = vld [vmem:[#allocation6 + $0x110] sm:$0xf0]  ;;  %v3945_v22 = vld [vmem:[#allocation6 + $0xc8] sm:$0xf0] }
  0x73   :  { %1593 = vmatpush.bf16.msra.mxu3 %v3389_v38  ;;  %v3176_v38 = vld [vmem:[#allocation6 + $0x328] sm:$0xf]  ;;  %v3465_v42 = vor.u32 %v4097_v35, %v3464_v34  ;;  %v3981_v34 = vld [vmem:[#allocation6 + $0x1e8] sm:$0xf0] }
  0x74   :  { %1552 = vmatpush.bf16.msra.mxu0 %v3349_v45  ;;  %v2890_v45 = vld [vmem:[#allocation6 + $0x10c] sm:$0xf0]  ;;  %v3004_v33 = vld [vmem:[#allocation6 + $0x1c8] sm:$0xf] }
  0x75   :  { %1566 = vmatpush.bf16.msra.mxu1 %v2777_v48  ;;  %v3177_v48 = vor.u32 %v4025_v39, %v3176_v38  ;;  %v2893_v53 = vor.u32 %v3949_v44, %v2890_v45  ;;  %v2785_v38 = vor.u32 %v3922_v26, %v2782_v27  ;;  %v4039_v39 = vld [vmem:[#allocation6 + $0x3bc] sm:$0xf]  ;;  %v4053_v44 = vld [vmem:[#allocation6 + $0x428] sm:$0xf0]  ;;  %v3142_v15 = vld [vmem:[#allocation6 + $0x304] sm:$0xf0] }
  0x76   :  { %1580 = vmatpush.bf16.msra.mxu2 %v3065_v49  ;;  %v2853_v49 = vor.u32 %v3944_v43, %v2852_v40  ;;  %v3250_v40 = vld [vmem:[#allocation6 + $0x3dc] sm:$0xf0]  ;;  %v3292_v43 = vld [vmem:[#allocation6 + $0x408] sm:$0xf]  ;;  %v3145_v23 = vor.u32 %v4012_v14, %v3142_v15  ;;  %v4003_v26 = vld [vmem:[#allocation6 + $0x29c] sm:$0xf] }
  0x77   :  { %1594 = vmatpush.bf16.msra.mxu3 %v3353_v50  ;;  %1553 = vmatmul.bf16.vlgmr.msra.gmra.mxu0 %v4428_v9  ;;  %v3140_v50 = vld [vmem:[#allocation6 + $0x2e0] sm:$0xf]  ;;  %v3977_v14 = vld [vmem:[#allocation6 + $0x1cc] sm:$0xf]  ;;  %v3006_v15 = vld [vmem:[#allocation6 + $0x1ec] sm:$0xf0] }
  0x78   :  { %1601 = vmatpush.bf16.msrb.mxu0 %v3033_v51  ;;  %1567 = vmatmul.bf16.vlgmr.msra.gmra.mxu1 %v4422_v58  ;;  %v4016_v51 = vld [vmem:[#allocation6 + $0x300] sm:$0xf0]  ;;  %v3106_v27 = vld [vmem:[#allocation6 + $0x2bc] sm:$0xf0] }
  0x79   :  { %1581 = vmatmul.bf16.vlgmr.msra.gmra.mxu2 %v4425_v5  ;;  %1615 = vmatpush.bf16.msrb.mxu1 %v3321_v62  ;;  %v3141_v61 = vor.u32 %v4016_v51, %v3140_v50  ;;  %v3104_v62 = vld [vmem:[#allocation6 + $0x298] sm:$0xf]  ;;  %v3538_v50 = vld [vmem:[#allocation6 + $0x61c] sm:$0xf0]  ;;  %v4030_v51 = vld [vmem:[#allocation6 + $0x374] sm:$0xf] }
  0x7a   :  { %1629 = vmatpush.bf16.msrb.mxu2 %v3609_v55  ;;  %1595 = vmatmul.bf16.vlgmr.msra.gmra.mxu3 %v4428_v9  ;;  %v3935_v55 = vld [vmem:[#allocation6 + $0x78] sm:$0xf0] }
  0x7b   :  { %1643 = vmatpush.bf16.msrb.mxu3 %v3037_v3  ;;  %v2857_v3 = vor.u32 %v3940_v56, %v2854_v57  ;;  %v4044_v56 = vld [vmem:[#allocation6 + $0x3e0] sm:$0xf0] }
  0x7c   :  { %1602 = vmatpush.bf16.msrb.mxu0 %v2997_v63  ;;  %v2817_v63 = vor.u32 %v3935_v55, %v2816_v52  ;;  %v3214_v52 = vld [vmem:[#allocation6 + $0x394] sm:$0xf0]  ;;  %v3256_v55 = vld [vmem:[#allocation6 + $0x3c0] sm:$0xf] }
  0x7d   :  { %1616 = vmatpush.bf16.msrb.mxu1 %v3285_v12  ;;  %v3322_v12 = vld [vmem:[#allocation6 + $0x46c] sm:$0xf0]  ;;  %v3257_v2 = vor.u32 %v4044_v56, %v3256_v55  ;;  %v4058_v56 = vld [vmem:[#allocation6 + $0x454] sm:$0xf] }
  0x7e   :  { %1630 = vmatpush.bf16.msrb.mxu2 %v3573_v4  ;;  %v3393_v4 = vor.u32 %v4079_v60, %v3392_v59  ;;  %v3325_v21 = vor.u32 %v4057_v11, %v3322_v12  ;;  %v2932_v59 = vld [vmem:[#allocation6 + $0x138] sm:$0xf]  ;;  %v3963_v60 = vld [vmem:[#allocation6 + $0x158] sm:$0xf0]  ;;  %v4093_v12 = vld [vmem:[#allocation6 + $0x56c] sm:$0xf] }
  0x7f   :  { %1644 = vmatpush.bf16.msrb.mxu3 %v3001_v17  ;;  %v3068_v17 = vld [vmem:[#allocation6 + $0x250] sm:$0xf] }
  0x80   :  { %1603 = vmatpush.bf16.msrb.mxu0 %v2961_v13  ;;  %v3105_v13 = vor.u32 %v4007_v0, %v3104_v62  ;;  %v4102_v62 = vld [vmem:[#allocation6 + $0x5b4] sm:$0xf]  ;;  %v4021_v0 = vld [vmem:[#allocation6 + $0x32c] sm:$0xf] }
  0x81   :  { %1617 = vmatpush.bf16.msrb.mxu1 %v3249_v24  ;;  %v4048_v24 = vld [vmem:[#allocation6 + $0x404] sm:$0xf]  ;;  %v3181_v11 = vor.u32 %v4021_v0, %v3178_v1  ;;  %v4130_v1 = vld [vmem:[#allocation6 + $0x694] sm:$0xf] }
  0x82   :  { %1631 = vmatpush.bf16.msrb.mxu2 %v3537_v18  ;;  %v3998_v18 = vld [vmem:[#allocation6 + $0x270] sm:$0xf0] }
  0x83   :  { %1645 = vmatpush.bf16.msrb.mxu3 %v2965_v29  ;;  %v3069_v29 = vor.u32 %v3998_v18, %v3068_v17  ;;  %v2897_v17 = vor.u32 %v3954_v10, %v2896_v8  ;;  %v3184_v18 = vld [vmem:[#allocation6 + $0x330] sm:$0xf]  ;;  %v4049_v10 = vld [vmem:[#allocation6 + $0x40c] sm:$0xf] }
  0x84   :  { %1604 = vmatpush.bf16.msrb.mxu0 %v2925_v25  ;;  %v3286_v25 = vld [vmem:[#allocation6 + $0x424] sm:$0xf0] }
  0x85   :  { %1618 = vmatpush.bf16.msrb.mxu1 %v3213_v36  ;;  %v3289_v35 = vor.u32 %v4048_v24, %v3286_v25  ;;  %v4120_v36 = vld [vmem:[#allocation6 + $0x644] sm:$0xf]  ;;  %v3430_v25 = vld [vmem:[#allocation6 + $0x544] sm:$0xf0] }
  0x86   :  { %1632 = vmatpush.bf16.msrb.mxu2 %v3501_v30  ;;  %v3328_v30 = vld [vmem:[#allocation6 + $0x450] sm:$0xf]  ;;  %v4084_v24 = vld [vmem:[#allocation6 + $0x524] sm:$0xf] }
  0x87   :  { %1646 = vmatpush.bf16.msrb.mxu3 %v2929_v41  ;;  %v3329_v41 = vor.u32 %v4062_v31, %v3328_v30  ;;  %v3148_v30 = vld [vmem:[#allocation6 + $0x2e8] sm:$0xf]  ;;  %v4017_v31 = vld [vmem:[#allocation6 + $0x308] sm:$0xf0] }
  0x88   :  { %1605 = vmatpush.bf16.msrb.mxu0 %v2889_v37  ;;  %v3574_v37 = vld [vmem:[#allocation6 + $0x664] sm:$0xf0] }
  0x89   :  { %1619 = vmatpush.bf16.msrb.mxu1 %v3177_v48  ;;  %v3577_v45 = vor.u32 %v4120_v36, %v3574_v37  ;;  %v3253_v48 = vor.u32 %v4039_v39, %v3250_v40  ;;  %v4075_v36 = vld [vmem:[#allocation6 + $0x4dc] sm:$0xf]  ;;  %v3394_v37 = vld [vmem:[#allocation6 + $0x4fc] sm:$0xf0]  ;;  %v3070_v39 = vld [vmem:[#allocation6 + $0x274] sm:$0xf0] }
  0x8a   :  { %1633 = vmatpush.bf16.msrb.mxu2 %v3465_v42  ;;  %v3005_v42 = vor.u32 %v3981_v34, %v3004_v33  ;;  %v2824_v33 = vld [vmem:[#allocation6 + $0x60] sm:$0xf]  ;;  %v3936_v34 = vld [vmem:[#allocation6 + $0x80] sm:$0xf0]  ;;  %v3616_v40 = vld [vmem:[#allocation6 + $0x690] sm:$0xf] }
  0x8b   :  { %1647 = vmatpush.bf16.msrb.mxu3 %v2893_v53  ;;  %v3293_v53 = vor.u32 %v4053_v44, %v3292_v43  ;;  %v2825_v43 = vor.u32 %v3936_v34, %v2824_v33  ;;  %v3112_v44 = vld [vmem:[#allocation6 + $0x2a0] sm:$0xf]  ;;  %v3472_v33 = vld [vmem:[#allocation6 + $0x570] sm:$0xf]  ;;  %v4031_v34 = vld [vmem:[#allocation6 + $0x37c] sm:$0xf] }
  0x8c   :  { %1606 = vmatpush.bf16.msrb.mxu0 %v2853_v49  ;;  %v4111_v49 = vld [vmem:[#allocation6 + $0x5fc] sm:$0xf] }
  0x8d   :  { %1620 = vmatpush.bf16.msrb.mxu1 %v3141_v61  ;;  %v3541_v57 = vor.u32 %v4111_v49, %v3538_v50  ;;  %v3217_v61 = vor.u32 %v4030_v51, %v3214_v52  ;;  %v3927_v49 = vld [vmem:[#allocation6 + $0x38] sm:$0xf0]  ;;  %v3358_v51 = vld [vmem:[#allocation6 + $0x4b4] sm:$0xf0]  ;;  %v3580_v52 = vld [vmem:[#allocation6 + $0x648] sm:$0xf] }
  0x8e   :  { %1634 = vmatpush.bf16.msrb.mxu2 %v3429_v54  ;;  %v2969_v54 = vor.u32 %v3972_v47, %v2968_v46  ;;  %v3397_v46 = vor.u32 %v4075_v36, %v3394_v37  ;;  %v4066_v47 = vld [vmem:[#allocation6 + $0x494] sm:$0xf] }
  0x8f   :  { %1648 = vmatpush.bf16.msrb.mxu3 %v2857_v3  ;;  %v2933_v3 = vor.u32 %v3963_v60, %v2932_v59  ;;  %v3076_v59 = vld [vmem:[#allocation6 + $0x258] sm:$0xf]  ;;  %v3361_v0 = vor.u32 %v4066_v47, %v3358_v51  ;;  %v4098_v36 = vld [vmem:[#allocation6 + $0x590] sm:$0xf0] }
  0x90   :  { %1607 = vmatpush.bf16.msrb.mxu0 %v2817_v63  ;;  %v3502_v63 = vld [vmem:[#allocation6 + $0x5d4] sm:$0xf0] }
  0x91   :  { %1621 = vmatpush.bf16.msrb.mxu1 %v3105_v13  ;;  %v3505_v7 = vor.u32 %v4102_v62, %v3502_v63  ;;  %v3466_v13 = vld [vmem:[#allocation6 + $0x58c] sm:$0xf0]  ;;  %v3986_v62 = vld [vmem:[#allocation6 + $0x214] sm:$0xf]  ;;  %v3042_v63 = vld [vmem:[#allocation6 + $0x234] sm:$0xf0] }
  0x92   :  { %1635 = vmatpush.bf16.msrb.mxu2 %v3393_v4  ;;  %v3220_v4 = vld [vmem:[#allocation6 + $0x378] sm:$0xf] }
  0x93   :  { %1649 = vmatpush.bf16.msrb.mxu3 %v2821_v19  ;;  %v4026_v19 = vld [vmem:[#allocation6 + $0x350] sm:$0xf0]  ;;  %v3186_v47 = vld [vmem:[#allocation6 + $0x354] sm:$0xf0] }
  0x94   :  { %1608 = vmatpush.bf16.msrb.mxu0 %v2781_v16  ;;  %v3221_v16 = vor.u32 %v4035_v6, %v3220_v4  ;;  %v3045_v4 = vor.u32 %v3986_v62, %v3042_v63  ;;  %v2898_v51 = vld [vmem:[#allocation6 + $0x114] sm:$0xf0]  ;;  %v3150_v62 = vld [vmem:[#allocation6 + $0x30c] sm:$0xf0]  ;;  %v4080_v63 = vld [vmem:[#allocation6 + $0x500] sm:$0xf0] }
  0x95   :  { %1622 = vmatpush.bf16.msrb.mxu1 %v3069_v29 }
  0x96   :  { %1636 = vmatpush.bf16.msrb.mxu2 %v3357_v20  ;;  %v3469_v20 = vor.u32 %v4093_v12, %v3466_v13  ;;  %v4116_v12 = vld [vmem:[#allocation6 + $0x620] sm:$0xf0] }
  0x97   :  { %1609 = vmatmul.bf16.vlgmr.msrb.gmra.mxu0 %v4422_v58  ;;  %1650 = vmatpush.bf16.msrb.mxu3 %v2785_v38  ;;  %v3994_v38 = vld [vmem:[#allocation6 + $0x254] sm:$0xf] }
  0x98   :  { %1657 = vmatpush.bf16.msra.mxu0 %v3325_v21  ;;  %1623 = vmatmul.bf16.vlgmr.msrb.gmra.mxu1 %v4425_v5  ;;  %v2860_v21 = vld [vmem:[#allocation6 + $0xa8] sm:$0xf]  ;;  %v3073_v50 = vor.u32 %v3994_v38, %v3070_v39  ;;  %v3959_v38 = vld [vmem:[#allocation6 + $0x13c] sm:$0xf]  ;;  %v2934_v39 = vld [vmem:[#allocation6 + $0x15c] sm:$0xf0] }
  0x99   :  { %1637 = vmatmul.bf16.vlgmr.msrb.gmra.mxu2 %v4428_v9  ;;  %1671 = vmatpush.bf16.msra.mxu1 %v3613_v32  ;;  %v2861_v29 = vor.u32 %v3945_v22, %v2860_v21  ;;  %v3433_v32 = vor.u32 %v4084_v24, %v3430_v25  ;;  %v3508_v21 = vld [vmem:[#allocation6 + $0x5b8] sm:$0xf]  ;;  %v4040_v22 = vld [vmem:[#allocation6 + $0x3c4] sm:$0xf]  ;;  %v4107_v24 = vld [vmem:[#allocation6 + $0x5d8] sm:$0xf0] }
  0x9a   :  { %1685 = vmatpush.bf16.msra.mxu2 %v3041_v28  ;;  %1651 = vmatmul.bf16.vlgmr.msrb.gmra.mxu3 %v4422_v58  ;;  %v3185_v28 = vor.u32 %v4026_v19, %v3184_v18  ;;  %v3009_v19 = vor.u32 %v3977_v14, %v3006_v15  ;;  %v4071_v14 = vld [vmem:[#allocation6 + $0x4b8] sm:$0xf0] }
  0x9b   :  { %1699 = vmatpush.bf16.msra.mxu3 %v3329_v41  ;;  %v3149_v41 = vor.u32 %v4017_v31, %v3148_v30 }
  0x9c   :  { %1658 = vmatpush.bf16.msra.mxu0 %v3289_v35  ;;  %v3109_v35 = vor.u32 %v4003_v26, %v3106_v27  ;;  %v3968_v26 = vld [vmem:[#allocation6 + $0x184] sm:$0xf]  ;;  %v2970_v27 = vld [vmem:[#allocation6 + $0x1a4] sm:$0xf0] }
  0x9d   :  { %1672 = vmatpush.bf16.msra.mxu1 %v3577_v45  ;;  %v4008_v45 = vld [vmem:[#allocation6 + $0x2c0] sm:$0xf0]  ;;  %v2973_v31 = vor.u32 %v3968_v26, %v2970_v27  ;;  %v3078_v26 = vld [vmem:[#allocation6 + $0x27c] sm:$0xf0] }
  0x9e   :  { %1686 = vmatpush.bf16.msra.mxu2 %v3005_v42  ;;  %v4134_v42 = vld [vmem:[#allocation6 + $0x6b0] sm:$0xf0]  ;;  %v3113_v55 = vor.u32 %v4008_v45, %v3112_v44  ;;  %v3473_v44 = vor.u32 %v4098_v36, %v3472_v33  ;;  %v3436_v45 = vld [vmem:[#allocation6 + $0x528] sm:$0xf] }
  0x9f   :  { %1700 = vmatpush.bf16.msra.mxu3 %v3293_v53  ;;  %v4125_v53 = vld [vmem:[#allocation6 + $0x668] sm:$0xf0] }
  0xa0   :  { %1659 = vmatpush.bf16.msra.mxu0 %v3253_v48  ;;  %v2788_v48 = vld [vmem:[#allocation6 + $0x18] sm:$0xf]  ;;  %v3581_v6 = vor.u32 %v4125_v53, %v3580_v52 }
  0xa1   :  { %1673 = vmatpush.bf16.msra.mxu1 %v3541_v57  ;;  %v3330_v57 = vld [vmem:[#allocation6 + $0x474] sm:$0xf0]  ;;  %v2789_v60 = vor.u32 %v3927_v49, %v2788_v48  ;;  %v4089_v48 = vld [vmem:[#allocation6 + $0x548] sm:$0xf0] }
  0xa2   :  { %1687 = vmatpush.bf16.msra.mxu2 %v2969_v54  ;;  %v3617_v54 = vor.u32 %v4134_v42, %v3616_v40  ;;  %v4103_v40 = vld [vmem:[#allocation6 + $0x5bc] sm:$0xf] }
  0xa3   :  { %1701 = vmatpush.bf16.msra.mxu3 %v3257_v2  ;;  %v3618_v2 = vld [vmem:[#allocation6 + $0x6b4] sm:$0xf0] }
  0xa4   :  { %1660 = vmatpush.bf16.msra.mxu0 %v3217_v61  ;;  %v3999_v61 = vld [vmem:[#allocation6 + $0x278] sm:$0xf0]  ;;  %v3621_v13 = vor.u32 %v4130_v1, %v3618_v2  ;;  %v3941_v1 = vld [vmem:[#allocation6 + $0xac] sm:$0xf]  ;;  %v2862_v2 = vld [vmem:[#allocation6 + $0xcc] sm:$0xf0] }
  0xa5   :  { %1674 = vmatpush.bf16.msra.mxu1 %v3505_v7  ;;  %v3544_v7 = vld [vmem:[#allocation6 + $0x600] sm:$0xf]  ;;  %v3077_v8 = vor.u32 %v3999_v61, %v3076_v59  ;;  %v3437_v59 = vor.u32 %v4089_v48, %v3436_v45  ;;  %v4013_v61 = vld [vmem:[#allocation6 + $0x2ec] sm:$0xf]  ;;  %v3624_v48 = vld [vmem:[#allocation6 + $0x698] sm:$0xf] }
  0xa6   :  { %1688 = vmatpush.bf16.msra.mxu2 %v2933_v3  ;;  %v3333_v3 = vor.u32 %v4058_v56, %v3330_v57 }
  0xa7   :  { %1702 = vmatpush.bf16.msra.mxu3 %v3221_v16  ;;  %v4121_v16 = vld [vmem:[#allocation6 + $0x64c] sm:$0xf] }
  0xa8   :  { %1661 = vmatpush.bf16.msra.mxu0 %v3181_v11  ;;  %v3294_v11 = vld [vmem:[#allocation6 + $0x42c] sm:$0xf0] }
  0xa9   :  { %1675 = vmatpush.bf16.msra.mxu1 %v3469_v20  ;;  %v3297_v18 = vor.u32 %v4049_v10, %v3294_v11  ;;  %v3545_v20 = vor.u32 %v4116_v12, %v3544_v7  ;;  %v2865_v7 = vor.u32 %v3941_v1, %v2862_v2  ;;  %v3364_v11 = vld [vmem:[#allocation6 + $0x498] sm:$0xf]  ;;  %v4004_v12 = vld [vmem:[#allocation6 + $0x2a4] sm:$0xf]  ;;  %v3955_v2 = vld [vmem:[#allocation6 + $0x118] sm:$0xf0] }
  0xaa   :  { %1689 = vmatpush.bf16.msra.mxu2 %v2897_v17  ;;  %v3582_v17 = vld [vmem:[#allocation6 + $0x66c] sm:$0xf0]  ;;  %v2904_v1 = vld [vmem:[#allocation6 + $0xf8] sm:$0xf] }
  0xab   :  { %1703 = vmatpush.bf16.msra.mxu3 %v3185_v28  ;;  %v3585_v25 = vor.u32 %v4121_v16, %v3582_v17  ;;  %v4112_v28 = vld [vmem:[#allocation6 + $0x604] sm:$0xf]  ;;  %v2826_v17 = vld [vmem:[#allocation6 + $0x84] sm:$0xf0] }
  0xac   :  { %1662 = vmatpush.bf16.msra.mxu0 %v3145_v23  ;;  %v3258_v23 = vld [vmem:[#allocation6 + $0x3e4] sm:$0xf0]  ;;  %v3932_v16 = vld [vmem:[#allocation6 + $0x64] sm:$0xf] }
  0xad   :  { %1676 = vmatpush.bf16.msra.mxu1 %v3433_v32  ;;  %v3261_v30 = vor.u32 %v4040_v22, %v3258_v23  ;;  %v3509_v32 = vor.u32 %v4107_v24, %v3508_v21  ;;  %v2829_v21 = vor.u32 %v3932_v16, %v2826_v17  ;;  %v3365_v24 = vor.u32 %v4071_v14, %v3364_v11  ;;  %v3516_v14 = vld [vmem:[#allocation6 + $0x5c0] sm:$0xf]  ;;  %v4108_v17 = vld [vmem:[#allocation6 + $0x5e0] sm:$0xf0] }
  0xae   :  { %1690 = vmatpush.bf16.msra.mxu2 %v2861_v29  ;;  %v3546_v29 = vld [vmem:[#allocation6 + $0x624] sm:$0xf0] }
  0xaf   :  { %1704 = vmatpush.bf16.msra.mxu3 %v3149_v41  ;;  %v3549_v37 = vor.u32 %v4112_v28, %v3546_v29  ;;  %v3510_v41 = vld [vmem:[#allocation6 + $0x5dc] sm:$0xf0]  ;;  %v3923_v29 = vld [vmem:[#allocation6 + $0x1c] sm:$0xf] }
  0xb0   :  { %1663 = vmatpush.bf16.msra.mxu0 %v3109_v35  ;;  %v3222_v35 = vld [vmem:[#allocation6 + $0x39c] sm:$0xf0]  ;;  %v3513_v49 = vor.u32 %v4103_v40, %v3510_v41  ;;  %v3991_v40 = vld [vmem:[#allocation6 + $0x238] sm:$0xf0] }
  0xb1   :  { %1677 = vmatpush.bf16.msra.mxu1 %v3397_v46  ;;  %v3225_v42 = vor.u32 %v4031_v34, %v3222_v35  ;;  %v4022_v46 = vld [vmem:[#allocation6 + $0x334] sm:$0xf] }
  0xb2   :  { %1691 = vmatpush.bf16.msra.mxu2 %v2825_v43  ;;  %v2937_v43 = vor.u32 %v3959_v38, %v2934_v39  ;;  %v3189_v56 = vor.u32 %v4022_v46, %v3186_v47  ;;  %v3048_v39 = vld [vmem:[#allocation6 + $0x218] sm:$0xf]  ;;  %v2976_v46 = vld [vmem:[#allocation6 + $0x188] sm:$0xf]  ;;  %v3973_v47 = vld [vmem:[#allocation6 + $0x1a8] sm:$0xf0] }
  0xb3   :  { %1705 = vmatpush.bf16.msra.mxu3 %v3113_v55  ;;  %v3474_v55 = vld [vmem:[#allocation6 + $0x594] sm:$0xf0]  ;;  %v3049_v41 = vor.u32 %v3991_v40, %v3048_v39 }
  0xb4   :  { %1664 = vmatpush.bf16.msra.mxu0 %v3073_v50  ;;  %v3950_v50 = vld [vmem:[#allocation6 + $0xf4] sm:$0xf]  ;;  %v4448_v52 = vpop.f32.mrf.mxu0 }
  0xb5   :  { %1678 = vmatpush.bf16.msra.mxu1 %v3361_v0  ;;  %v4450_v53 = vpop.f32.mrf.mxu1  ;;  %v2901_v57 = vor.u32 %v3950_v50, %v2898_v51  ;;  %v4135_v50 = vld [vmem:[#allocation6 + $0x6b8] sm:$0xf0] }
  0xb6   :  { %1692 = vmatpush.bf16.msra.mxu2 %v2789_v60  ;;  %v3400_v60 = vld [vmem:[#allocation6 + $0x4e0] sm:$0xf]  ;;  %v3625_v51 = vor.u32 %v4135_v50, %v3624_v48  ;;  %v1457_v50 = vadd.f32 %v4450_v53, %v4448_v52 }
  0xb7   :  { %1665 = vmatmul.bf16.vlgmr.msra.gmra.mxu0 %v4425_v5  ;;  %1706 = vmatpush.bf16.msra.mxu3 %v3077_v8  ;;  %v3401_v10 = vor.u32 %v4080_v63, %v3400_v60 }
  0xb8   :  { %1713 = vmatpush.bf16.msrb.mxu0 %v3617_v54  ;;  %1679 = vmatmul.bf16.vlgmr.msra.gmra.mxu1 %v4428_v9  ;;  %v4094_v54 = vld [vmem:[#allocation6 + $0x574] sm:$0xf] }
  0xb9   :  { %1727 = vmatpush.bf16.msrb.mxu1 %v3045_v4  ;;  %1693 = vmatmul.bf16.vlgmr.msra.gmra.mxu2 %v4422_v58  ;;  %v3477_v0 = vor.u32 %v4094_v54, %v3474_v55  ;;  %v3438_v4 = vld [vmem:[#allocation6 + $0x54c] sm:$0xf0] }
  0xba   :  { %1741 = vmatpush.bf16.msrb.mxu2 %v3333_v3  ;;  %1707 = vmatmul.bf16.vlgmr.msra.gmra.mxu3 %v4425_v5  ;;  %v4085_v3 = vld [vmem:[#allocation6 + $0x52c] sm:$0xf] }
  0xbb   :  { %1755 = vmatpush.bf16.msrb.mxu3 %v3621_v13  ;;  %v3114_v13 = vld [vmem:[#allocation6 + $0x2c4] sm:$0xf0]  ;;  %v3441_v15 = vor.u32 %v4085_v3, %v3438_v4  ;;  %v2905_v4 = vor.u32 %v3955_v2, %v2904_v1 }
  0xbc   :  { %1714 = vmatpush.bf16.msrb.mxu0 %v3581_v6  ;;  %v3153_v6 = vor.u32 %v4013_v61, %v3150_v62  ;;  %v4452_v8 = vpop.f32.mrf.mxu2  ;;  %v1444_v22 = vpop.f32.mrf.mxu0  ;;  %v4126_v62 = vld [vmem:[#allocation6 + $0x670] sm:$0xf0]  ;;  %v3552_v3 = vld [vmem:[#allocation6 + $0x608] sm:$0xf] }
  0xbd   :  { %1728 = vmatpush.bf16.msrb.mxu1 %v3009_v19  ;;  %v3402_v19 = vld [vmem:[#allocation6 + $0x504] sm:$0xf0]  ;;  %v1458_v23 = vpop.f32.mrf.mxu1  ;;  %v4454_v33 = vpop.f32.mrf.mxu3 }
  0xbe   :  { %1742 = vmatpush.bf16.msrb.mxu2 %v3297_v18  ;;  %v4076_v18 = vld [vmem:[#allocation6 + $0x4e4] sm:$0xf]  ;;  %v1459_v27 = vadd.f32 %v1458_v23, %v1444_v22  ;;  %v3480_v22 = vld [vmem:[#allocation6 + $0x578] sm:$0xf] }
  0xbf   :  { %1756 = vmatpush.bf16.msrb.mxu3 %v3585_v25  ;;  %v3995_v25 = vld [vmem:[#allocation6 + $0x25c] sm:$0xf]  ;;  %v3405_v28 = vor.u32 %v4076_v18, %v3402_v19  ;;  %v3517_v19 = vor.u32 %v4108_v17, %v3516_v14 }
  0xc0   :  { %1715 = vmatpush.bf16.msrb.mxu0 %v3545_v20  ;;  %v3117_v20 = vor.u32 %v4004_v12, %v3114_v13  ;;  %v3081_v34 = vor.u32 %v3995_v25, %v3078_v26  ;;  %v2868_v12 = vld [vmem:[#allocation6 + $0xb0] sm:$0xf]  ;;  %v3946_v13 = vld [vmem:[#allocation6 + $0xd0] sm:$0xf0]  ;;  %v2796_v26 = vld [vmem:[#allocation6 + $0x20] sm:$0xf] }
  0xc1   :  { %1729 = vmatpush.bf16.msrb.mxu1 %v2973_v31  ;;  %v4067_v31 = vld [vmem:[#allocation6 + $0x49c] sm:$0xf]  ;;  %v2869_v16 = vor.u32 %v3946_v13, %v2868_v12 }
  0xc2   :  { %1743 = vmatpush.bf16.msrb.mxu2 %v3261_v30  ;;  %v2790_v30 = vld [vmem:[#allocation6 + $0x3c] sm:$0xf0]  ;;  %v4063_v17 = vld [vmem:[#allocation6 + $0x478] sm:$0xf0] }
  0xc3   :  { %1757 = vmatpush.bf16.msrb.mxu3 %v3549_v37  ;;  %v2793_v36 = vor.u32 %v3923_v29, %v2790_v30  ;;  %v3444_v29 = vld [vmem:[#allocation6 + $0x530] sm:$0xf]  ;;  %v4090_v30 = vld [vmem:[#allocation6 + $0x550] sm:$0xf0] }
  0xc4   :  { %1716 = vmatpush.bf16.msrb.mxu0 %v3509_v32  ;;  %v3366_v32 = vld [vmem:[#allocation6 + $0x4bc] sm:$0xf0]  ;;  %v1472_v35 = vpop.f32.mrf.mxu2 }
  0xc5   :  { %1730 = vmatpush.bf16.msrb.mxu1 %v2937_v43  ;;  %v4456_v37 = vadd.f32 %v1472_v35, %v1459_v27  ;;  %v3369_v38 = vor.u32 %v4067_v31, %v3366_v32  ;;  %v3012_v43 = vld [vmem:[#allocation6 + $0x1d0] sm:$0xf]  ;;  %v3928_v27 = vld [vmem:[#allocation6 + $0x40] sm:$0xf0]  ;;  %v3445_v32 = vor.u32 %v4090_v30, %v3444_v29  ;;  %v4081_v35 = vld [vmem:[#allocation6 + $0x508] sm:$0xf0] }
  0xc6   :  { %1744 = vmatpush.bf16.msrb.mxu2 %v3225_v42  ;;  %v4462_v42 = vpop.f32.mrf.mxu3  ;;  %v2797_v31 = vor.u32 %v3928_v27, %v2796_v26  ;;  %v3228_v26 = vld [vmem:[#allocation6 + $0x380] sm:$0xf] }
  0xc7   :  { %1758 = vmatpush.bf16.msrb.mxu3 %v3513_v49  ;;  %v2977_v49 = vor.u32 %v3973_v47, %v2976_v46  ;;  %v1965_v29 = vpack.c.bf16 %v4456_v37, %v4456_v37 }
  0xc8   :  { %1717 = vmatpush.bf16.msrb.mxu0 %v3473_v44  ;;  %v3982_v44 = vld [vmem:[#allocation6 + $0x1f0] sm:$0xf0] }
  0xc9   :  { %1731 = vmatpush.bf16.msrb.mxu1 %v2901_v57  ;;  %v3013_v45 = vor.u32 %v3982_v44, %v3012_v43  ;;  %v3964_v57 = vld [vmem:[#allocation6 + $0x160] sm:$0xf0] }
  0xca   :  { %1745 = vmatpush.bf16.msrb.mxu2 %v3189_v56  ;;  %v2940_v56 = vld [vmem:[#allocation6 + $0x140] sm:$0xf]  ;;  %v4072_v43 = vld [vmem:[#allocation6 + $0x4c0] sm:$0xf0] }
  0xcb   :  { %1759 = vmatpush.bf16.msrb.mxu3 %v3477_v0  ;;  %v2941_v61 = vor.u32 %v3964_v57, %v2940_v56 }
  0xcc   :  { %1718 = vmatpush.bf16.msrb.mxu0 %v3437_v59  ;;  %v3588_v59 = vld [vmem:[#allocation6 + $0x650] sm:$0xf] }
  0xcd   :  { %1732 = vmatpush.bf16.msrb.mxu1 %v2865_v7  ;;  %v3589_v63 = vor.u32 %v4126_v62, %v3588_v59 }
  0xce   :  { %1746 = vmatpush.bf16.msrb.mxu2 %v3153_v6  ;;  %v4117_v6 = vld [vmem:[#allocation6 + $0x628] sm:$0xf0] }
  0xcf   :  { %1760 = vmatpush.bf16.msrb.mxu3 %v3441_v15  ;;  %v3553_v7 = vor.u32 %v4117_v6, %v3552_v3 }
  0xd0   :  { %1719 = vmatpush.bf16.msrb.mxu0 %v3401_v10 }
  0xd1   :  { %1733 = vmatpush.bf16.msrb.mxu1 %v2829_v21  ;;  %v3937_v21 = vld [vmem:[#allocation6 + $0x88] sm:$0xf0] }
  0xd2   :  { %1747 = vmatpush.bf16.msrb.mxu2 %v3117_v20  ;;  %v2832_v20 = vld [vmem:[#allocation6 + $0x68] sm:$0xf] }
  0xd3   :  { %1761 = vmatpush.bf16.msrb.mxu3 %v3405_v28  ;;  %v2833_v23 = vor.u32 %v3937_v21, %v2832_v20  ;;  %v4054_v20 = vld [vmem:[#allocation6 + $0x430] sm:$0xf0] }
  0xd4   :  { %1720 = vmatpush.bf16.msrb.mxu0 %v3365_v24  ;;  %v4464_v0 = vpop.f32.mrf.mxu0  ;;  %v4099_v24 = vld [vmem:[#allocation6 + $0x598] sm:$0xf0] }
  0xd5   :  { %1734 = vmatpush.bf16.msrb.mxu1 %v2793_v36  ;;  %v4468_v18 = vpop.f32.mrf.mxu1  ;;  %v3481_v25 = vor.u32 %v4099_v24, %v3480_v22  ;;  %v1499_v52 = vadd.f32 %v4464_v0, %v4454_v33  ;;  %v3300_v33 = vld [vmem:[#allocation6 + $0x410] sm:$0xf]  ;;  %v3264_v24 = vld [vmem:[#allocation6 + $0x3c8] sm:$0xf] }
  0xd6   :  { %1748 = vmatpush.bf16.msrb.mxu2 %v3081_v34  ;;  %v3408_v34 = vld [vmem:[#allocation6 + $0x4e8] sm:$0xf]  ;;  %v3301_v21 = vor.u32 %v4054_v20, %v3300_v33 }
  0xd7   :  { %1721 = vmatmul.bf16.vlgmr.msrb.gmra.mxu0 %v4428_v9  ;;  %1762 = vmatpush.bf16.msrb.mxu3 %v3369_v38  ;;  %v3409_v38 = vor.u32 %v4081_v35, %v3408_v34  ;;  %v4027_v34 = vld [vmem:[#allocation6 + $0x358] sm:$0xf0] }
  0xd8   :  { %1735 = vmatmul.bf16.vlgmr.msrb.gmra.mxu1 %v4422_v58  ;;  %1769 = vmatpush.bf16.msra.mxu0 %v3049_v41  ;;  %v3372_v41 = vld [vmem:[#allocation6 + $0x4a0] sm:$0xf] }
  0xd9   :  { %1749 = vmatmul.bf16.vlgmr.msrb.gmra.mxu2 %v4425_v5  ;;  %v3373_v44 = vor.u32 %v4072_v43, %v3372_v41  ;;  %v4018_v41 = vld [vmem:[#allocation6 + $0x310] sm:$0xf0] }
  0xda   :  { %1763 = vmatmul.bf16.vlgmr.msrb.gmra.mxu3 %v4428_v9  ;;  %1797 = vmatpush.bf16.msra.mxu2 %v3625_v51 }
  0xdc   :  { %1770 = vmatpush.bf16.msra.mxu0 %v3013_v45  ;;  %v1526_v54 = vpop.f32.mrf.mxu2  ;;  %v1500_v28 = vpop.f32.mrf.mxu0 }
  0xdd   :  { %v1540_v55 = vpop.f32.mrf.mxu3  ;;  %v1514_v36 = vpop.f32.mrf.mxu1  ;;  %v1501_v13 = vadd.f32 %v1500_v28, %v4462_v42  ;;  %v4036_v28 = vld [vmem:[#allocation6 + $0x3a0] sm:$0xf0] }
  0xde   :  { %v1541_v60 = vadd.f32 %v1540_v55, %v1526_v54  ;;  %1798 = vmatpush.bf16.msra.mxu2 %v3589_v63  ;;  %v1471_v54 = vadd.f32 %v4452_v8, %v1457_v50  ;;  %v3229_v30 = vor.u32 %v4036_v28, %v3228_v26 }
  0xdf   :  { %v1515_v0 = vadd.f32 %v1514_v36, %v1501_v13 }
  0xe0   :  { %1771 = vmatpush.bf16.msra.mxu0 %v2977_v49 }
  0xe1   :  { %v2014_v22 = vpack.c.bf16 %v1515_v0, %v1515_v0 }
  0xe2   :  { %1799 = vmatpush.bf16.msra.mxu2 %v3553_v7  ;;  %v1513_v7 = vadd.f32 %v4468_v18, %v1499_v52 }
  0xe4   :  { %1772 = vmatpush.bf16.msra.mxu0 %v2941_v61  ;;  %v1528_v10 = vpop.f32.mrf.mxu2  ;;  %v1867_v12 = vpack.c.bf16 %v1513_v7, %v1513_v7 }
  0xe5   :  { %v1542_v11 = vpop.f32.mrf.mxu3 }
  0xe6   :  { %v4466_v15 = vadd.f32 %v1542_v11, %v1528_v10  ;;  %1800 = vmatpush.bf16.msra.mxu2 %v3517_v19 }
  0xe8   :  { %1773 = vmatpush.bf16.msra.mxu0 %v2905_v4 }
  0xea   :  { %1801 = vmatpush.bf16.msra.mxu2 %v3481_v25  ;;  %v4045_v25 = vld [vmem:[#allocation6 + $0x3e8] sm:$0xf0] }
  0xeb   :  { %v3265_v27 = vor.u32 %v4045_v25, %v3264_v24 }
  0xec   :  { %1774 = vmatpush.bf16.msra.mxu0 %v2869_v16  ;;  %v3336_v16 = vld [vmem:[#allocation6 + $0x458] sm:$0xf] }
  0xed   :  { %v3337_v19 = vor.u32 %v4063_v17, %v3336_v16 }
  0xee   :  { %1802 = vmatpush.bf16.msra.mxu2 %v3445_v32  ;;  %v3192_v32 = vld [vmem:[#allocation6 + $0x338] sm:$0xf] }
  0xef   :  { %1783 = vmatpush.bf16.msra.mxu1 %v3337_v19  ;;  %v1811_v19 = vlaneseq }
  0xf0   :  { %1775 = vmatpush.bf16.msra.mxu0 %v2833_v23 }
  0xf1   :  { %v1812_v20 = vshrl.u32 %v1811_v19, 7 }
  0xf2   :  { %1803 = vmatpush.bf16.msra.mxu2 %v3409_v38  ;;  %v3193_v38 = vor.u32 %v4027_v34, %v3192_v32 }
  0xf3   :  { %1784 = vmatpush.bf16.msra.mxu1 %v3301_v21  ;;  %v1814_v21 = vand.u32 127, %v1811_v19 }
  0xf4   :  { %1776 = vmatpush.bf16.msra.mxu0 %v2797_v31  ;;  %v1554_v39 = vpop.f32.mrf.mxu0 }
  0xf5   :  { %v4470_v40 = vadd.f32 %v1554_v39, %v1541_v60  ;;  %v1568_v45 = vpop.f32.mrf.mxu1  ;;  %v3156_v39 = vld [vmem:[#allocation6 + $0x2f0] sm:$0xf]  ;;  %vm4493_vm1 = vcmp.gt.s32.totalorder %v1814_v21, %v1812_v20 }
  0xf6   :  { %1804 = vmatpush.bf16.msra.mxu2 %v3373_v44 }
  0xf7   :  { %1777 = vmatmul.bf16.vlgmr.msra.gmra.mxu0 %v4422_v58  ;;  %v1816_v58 = vpack.c.bf16 %v1471_v54, %v1471_v54  ;;  %1785 = vmatpush.bf16.msra.mxu1 %v3265_v27  ;;  %v4000_v54 = vld [vmem:[#allocation6 + $0x280] sm:$0xf0] }
  0xf9   :  { %1805 = vmatmul.bf16.vlgmr.msra.gmra.mxu2 %v4428_v9 }
  0xfb   :  { %1786 = vmatpush.bf16.msra.mxu1 %v3229_v30 }
  0xfc   :  { %v1582_v46 = vpop.f32.mrf.mxu2  ;;  %v4477_v55 = vpop.f32.mrf.mxu0 }
  0xfd   :  { %v1583_v47 = vadd.f32 %v1582_v46, %v1568_v45  ;;  %v1596_v48 = vpop.f32.mrf.mxu3  ;;  %v1570_v56 = vpop.f32.mrf.mxu1  ;;  %v3157_v45 = vor.u32 %v4018_v41, %v3156_v39  ;;  %v1557_v37 = vadd.f32 %v4477_v55, %v4466_v15 }
  0xff   :  { %v1597_v49 = vadd.f32 %v1596_v48, %v1583_v47  ;;  %1787 = vmatpush.bf16.msra.mxu1 %v3193_v38  ;;  %v3120_v47 = vld [vmem:[#allocation6 + $0x2a8] sm:$0xf]  ;;  %v4009_v48 = vld [vmem:[#allocation6 + $0x2c8] sm:$0xf0] }
 0x101   :  { %v1817_v51 = vpack.c.bf16 %v1597_v49, %v1597_v49  ;;  %v3121_v49 = vor.u32 %v4009_v48, %v3120_v47 }
 0x103   :  { %1825 = vmatpush.bf16.xpose.msra.mxu3 %v1817_v51  ;;  %1788 = vmatpush.bf16.msra.mxu1 %v3157_v45  ;;  %v3084_v51 = vld [vmem:[#allocation6 + $0x260] sm:$0xf] }
 0x104   :  { %v1584_v57 = vpop.f32.mrf.mxu2 }
 0x105   :  { %v1585_v60 = vadd.f32 %v1584_v57, %v1570_v56  ;;  %v1598_v63 = vpop.f32.mrf.mxu3  ;;  %v3085_v56 = vor.u32 %v4000_v54, %v3084_v51 }
 0x107   :  { %v1599_v1 = vadd.f32 %v1598_v63, %v1585_v60  ;;  %1789 = vmatpush.bf16.msra.mxu1 %v3121_v49 }
 0x109   :  { %v1966_v8 = vpack.c.bf16 %v1599_v1, %v1599_v1 }
 0x10a   :  { %1826 = vmatmul.bf16.vlgmr.msra.gmra.mxu3 %v1816_v58  ;;  %v2063_v58 = vpack.c.bf16 %v1557_v37, %v1557_v37 }
 0x10b   :  { %1790 = vmatpush.bf16.msra.mxu1 %v3085_v56 }
 0x10e   :  { %1791 = vmatmul.bf16.vlgmr.msra.gmra.mxu1 %v4425_v5 }
 0x114   :  { %v1610_v59 = vpop.f32.mrf.mxu0 }
 0x115   :  { %v1624_v61 = vpop.f32.mrf.mxu1 }
 0x116   :  { %v1625_v62 = vadd.f32 %v1624_v61, %v1610_v59 }
 0x11c   :  { %v1638_v9 = vpop.f32.mrf.mxu2  ;;  %v1612_v53 = vpop.f32.mrf.mxu0 }
 0x11d   :  { %v1639_v2 = vadd.f32 %v1638_v9, %v1625_v62  ;;  %v1626_v4 = vpop.f32.mrf.mxu1  ;;  %v1652_v23 = vpop.f32.mrf.mxu3 }
 0x11e   :  { %v1627_v6 = vadd.f32 %v1626_v4, %v1612_v53 }
 0x11f   :  { %v1868_v3 = vpack.c.bf16 %v1639_v2, %v1639_v2 }
 0x121   :  { %1876 = vmatpush.bf16.xpose.msrb.mxu0 %v1868_v3 }
 0x124   :  { %v1640_v10 = vpop.f32.mrf.mxu2 }
 0x125   :  { %v1641_v11 = vadd.f32 %v1640_v10, %v1627_v6  ;;  %v1654_v31 = vpop.f32.mrf.mxu3 }
 0x127   :  { %v2015_v14 = vpack.c.bf16 %v1641_v11, %v1641_v11 }
 0x128   :  { %1877 = vmatmul.bf16.vlgmr.msrb.gmra.mxu0 %v1867_v12 }
 0x129   :  { %1974 = vmatpush.bf16.xpose.msra.mxu0 %v1966_v8  ;;  %2023 = vmatpush.bf16.xpose.msrb.mxu2 %v2015_v14 }
 0x130   :  { %2024 = vmatmul.bf16.vlgmr.msrb.gmra.mxu2 %v2014_v22 }
 0x134   :  { %v1666_v18 = vpop.f32.mrf.mxu0 }
 0x135   :  { %v1680_v42 = vpop.f32.mrf.mxu1  ;;  %v1667_v59 = vadd.f32 %v1666_v18, %v1652_v23 }
 0x137   :  { %v1681_v61 = vadd.f32 %v1680_v42, %v1667_v59 }
 0x138   :  { %1975 = vmatmul.bf16.vlgmr.msra.gmra.mxu0 %v1965_v29 }
 0x139   :  { %v1917_v55 = vpack.c.bf16 %v1681_v61, %v1681_v61 }
 0x13c   :  { %v1668_v35 = vpop.f32.mrf.mxu0  ;;  %v1694_v50 = vpop.f32.mrf.mxu2 }
 0x13d   :  { %v1669_v36 = vadd.f32 %v1668_v35, %v1654_v31  ;;  %v1682_v43 = vpop.f32.mrf.mxu1  ;;  %v1708_v57 = vpop.f32.mrf.mxu3 }
 0x13e   :  { %v1709_v60 = vadd.f32 %v1708_v57, %v1694_v50 }
 0x13f   :  { %v1683_v44 = vadd.f32 %v1682_v43, %v1669_v36 }
 0x141   :  { %v2064_v46 = vpack.c.bf16 %v1683_v44, %v1683_v44 }
 0x143   :  { %2072 = vmatpush.bf16.xpose.msrb.mxu0 %v2064_v46 }
 0x144   :  { %v1696_v62 = vpop.f32.mrf.mxu2 }
 0x145   :  { %v1710_v15 = vpop.f32.mrf.mxu3 }
 0x146   :  { %v1711_v52 = vadd.f32 %v1710_v15, %v1696_v62 }
 0x14a   :  { %2073 = vmatmul.bf16.vlgmr.msrb.gmra.mxu0 %v2063_v58 }
 0x154   :  { %v1722_v63 = vpop.f32.mrf.mxu0 }
 0x155   :  { %v1723_v1 = vadd.f32 %v1722_v63, %v1709_v60  ;;  %v1736_v53 = vpop.f32.mrf.mxu1 }
 0x157   :  { %v1845_v9 = vpack.c.bf16 %v1723_v1, %v1723_v1 }
 0x159   :  { %v1851_v2 = vsel %vm1849_vm0, %v1845_v9, 0 }
 0x15a   :  { %1860 = vmatpush.bf16.msrb.mxu3 %v1851_v2 }
 0x15c   :  { %v1724_v3 = vpop.f32.mrf.mxu0  ;;  %v1750_v8 = vpop.f32.mrf.mxu2 }
 0x15d   :  { %v1725_v4 = vadd.f32 %v1724_v3, %v1711_v52  ;;  %v1751_v6 = vadd.f32 %v1750_v8, %v1736_v53  ;;  %v1764_v7 = vpop.f32.mrf.mxu3  ;;  %v1738_v13 = vpop.f32.mrf.mxu1  ;;  %v1916_v3 = vpack.c.bf16 %v4470_v40, %v4470_v40 }
 0x15e   :  { %1925 = vmatpush.bf16.xpose.msra.mxu3 %v1917_v55 }
 0x15f   :  { %v1993_v10 = vpack.c.bf16 %v1725_v4, %v1725_v4  ;;  %v1765_v11 = vadd.f32 %v1764_v7, %v1751_v6 }
 0x161   :  { %v1895_v5 = vpack.c.bf16 %v1765_v11, %v1765_v11  ;;  %v1998_v12 = vsel %vm1849_vm0, %v1993_v10, 0 }
 0x163   :  { %v1900_v14 = vsel %vm1849_vm0, %v1895_v5, 0 }
 0x164   :  { %1909 = vmatpush.bf16.msrb.mxu1 %v1900_v14  ;;  %v1752_v16 = vpop.f32.mrf.mxu2 }
 0x165   :  { %v1753_v17 = vadd.f32 %v1752_v16, %v1738_v13  ;;  %v1766_v33 = vpop.f32.mrf.mxu3 }
 0x167   :  { %v4491_v0 = vadd.f32 %v1766_v33, %v1753_v17 }
 0x168   :  { %2007 = vmatpush.bf16.msra.mxu1 %v1998_v12 }
 0x169   :  { %v2042_v53 = vpack.c.bf16 %v4491_v0, %v4491_v0 }
 0x16b   :  { %v2047_v8 = vsel %vm1849_vm0, %v2042_v53, 0  ;;  %v3684_v53 = vld [vmem:[#allocation8 + $0x6c] sm:$0xf0] }
 0x174   :  { %v1778_v25 = vpop.f32.mrf.mxu0 }
 0x17c   :  { %v4500_v42 = vpop.f32.mrf.mxu0  ;;  %v1806_v27 = vpop.f32.mrf.mxu2 }
 0x184   :  { %v4505_v31 = vpop.f32.mrf.mxu2 }
 0x18b   :  { %v1792_v61 = vpop.f32.mrf.mxu1 }
 0x18c   :  { %v1793_v62 = vadd.f32 %v1792_v61, %v1778_v25  ;;  %v4152_v61 = vld [vmem:[#allocation8 + $0x80] sm:$0xf0] }
 0x18d   :  { %v1827_v23 = vpop.f32.mrf.mxu3 }
 0x18e   :  { %v1831_v18 = vsel %vm4493_vm1, -1e+30, %v1827_v23  ;;  %v1807_v1 = vadd.f32 %v1806_v27, %v1793_v62  ;;  %v4151_v62 = vld [vmem:[#allocation8 + $0x7c] sm:$0xf] }
 0x18f   :  { %v1833_v24 = vsel %vm1832_vm2, %v1831_v18, -inf }
 0x190   :  { %1834 = vmax.xlane.f32.xlu0 %v1833_v24  ;;  %v1944_v15 = vpack.c.bf16 %v1807_v1, %v1807_v1  ;;  %v3696_v1 = vld [vmem:[#allocation8 + $0x84] sm:$0xf0] }
 0x192   :  { %v1949_v52 = vsel %vm1849_vm0, %v1944_v15, 0  ;;  %v3699_v15 = vor.u32 %v4151_v62, %v3696_v1  ;;  %v3790_v62 = vld [vmem:[#allocation8 + $0x138] sm:$0xf] }
 0x193   :  { %v1794_v25 = vpop.f32.mrf.mxu1 }
 0x194   :  { %v1795_v27 = vadd.f32 %v1794_v25, %v4500_v42  ;;  %v4136_v25 = vld [vmem:[#allocation8 + $0x4] sm:$0xf] }
 0x195   :  { %v1829_v26 = vpop.f32.mrf.mxu3 }
 0x1a5   :  { %v1878_v28 = vpop.f32.mrf.mxu0 }
 0x1a6   :  { %v1882_v29 = vsel %vm4493_vm1, -1e+30, %v1878_v28 }
 0x1a7   :  { %v1883_v30 = vsel %vm1832_vm2, %v1882_v29, -inf }
 0x1a8   :  { %1884 = vmax.xlane.f32.xlu1 %v1883_v30  ;;  %v1809_v30 = vadd.f32 %v4505_v31, %v1795_v27 }
 0x1ad   :  { %v1880_v32 = vpop.f32.mrf.mxu0 }
 0x1b3   :  { %v2025_v34 = vpop.f32.mrf.mxu2 }
 0x1b4   :  { %v2029_v41 = vsel %vm4493_vm1, -1e+30, %v2025_v34 }
 0x1b5   :  { %v1976_v35 = vpop.f32.mrf.mxu0  ;;  %v2030_v44 = vsel %vm1832_vm2, %v2029_v41, -inf }
 0x1b6   :  { %v1980_v36 = vsel %vm4493_vm1, -1e+30, %v1976_v35  ;;  %v2091_v35 = vpack.c.bf16 %v1809_v30, %v1809_v30 }
 0x1b7   :  { %v1981_v38 = vsel %vm1832_vm2, %v1980_v36, -inf }
 0x1b8   :  { %1982 = vmax.xlane.f32.xlu2 %v1981_v38  ;;  %v2096_v42 = vsel %vm1849_vm0, %v2091_v35, 0 }
 0x1bb   :  { %v2027_v39 = vpop.f32.mrf.mxu2 }
 0x1bd   :  { %v1978_v43 = vpop.f32.mrf.mxu0 }
 0x1c0   :  { %2031 = vmax.xlane.f32.xlu2 %v2030_v44 }
 0x1c7   :  { %v2074_v45 = vpop.f32.mrf.mxu0 }
 0x1c8   :  { %v2078_v51 = vsel %vm4493_vm1, -1e+30, %v2074_v45 }
 0x1c9   :  { %v2079_v54 = vsel %vm1832_vm2, %v2078_v51, -inf }
 0x1cf   :  { %v2076_v46 = vpop.f32.mrf.mxu0 }
 0x1d0   :  { %v3718_v46 = vld [vmem:[#allocation8 + $0xa8] sm:$0xf] }
 0x203   :  { %v1835_v47 = vpop.xlane.xlu0 %1834 }
 0x204   :  { %v1836_v48 = vsub.f32 %v1831_v18, %v1835_v47  ;;  %v4158_v47 = vld [vmem:[#allocation8 + $0xb0] sm:$0xf0] }
 0x206   :  { %v1837_v37 = vmul.f32 1.442695, %v1836_v48  ;;  %v4157_v48 = vld [vmem:[#allocation8 + $0xac] sm:$0xf] }
 0x208   :  { %4219 = vpow2.f32 %v1837_v37  ;;  %v3719_v37 = vor.u32 %v4158_v47, %v3718_v46  ;;  %v4182_v47 = vld [vmem:[#allocation8 + $0x170] sm:$0xf0] }
 0x20a   :  { %2609 = vmatpush.bf16.msra.mxu2 %v3719_v37  ;;  %v3816_v37 = vld [vmem:[#allocation8 + $0x174] sm:$0xf0] }
 0x20e   :  { %v4220_v49 = vpop.eup %4219 }
 0x20f   :  { %v1839_v50 = vsel %vm1832_vm2, %v4220_v49, 0.0 }
 0x210   :  { %1840 = vadd.xlane.f32.xlu0 %v1839_v50 }
 0x218   :  { %2080 = vmax.xlane.f32.xlu0 %v2079_v54  ;;  %v4155_v54 = vld [vmem:[#allocation8 + $0x98] sm:$0xf0] }
 0x21b   :  { %v1885_v6 = vpop.xlane.xlu1 %1884 }
 0x21c   :  { %v1886_v10 = vsub.f32 %v1882_v29, %v1885_v6  ;;  %v4146_v6 = vld [vmem:[#allocation8 + $0x50] sm:$0xf0] }
 0x21e   :  { %v1887_v11 = vmul.f32 1.442695, %v1886_v10 }
 0x22b   :  { %v1983_v58 = vpop.xlane.xlu2 %1982 }
 0x22c   :  { %v1984_v56 = vsub.f32 %v1980_v36, %v1983_v58  ;;  %v4154_v58 = vld [vmem:[#allocation8 + $0x94] sm:$0xf] }
 0x22e   :  { %v1985_v57 = vmul.f32 1.442695, %v1984_v56 }
 0x230   :  { %4221 = vpow2.f32 %v1985_v57  ;;  %v3708_v57 = vld [vmem:[#allocation8 + $0x9c] sm:$0xf0] }
 0x233   :  { %v2032_v5 = vpop.xlane.xlu2 %2031 }
 0x234   :  { %v2033_v13 = vsub.f32 %v2029_v41, %v2032_v5 }
 0x236   :  { %v4517_v59 = vpop.eup %4221  ;;  %v2034_v40 = vmul.f32 1.442695, %v2033_v13  ;;  %v4143_v13 = vld [vmem:[#allocation8 + $0x38] sm:$0xf0] }
 0x237   :  { %v1987_v60 = vsel %vm1832_vm2, %v4517_v59, 0.0 }
 0x238   :  { %1988 = vadd.xlane.f32.xlu0 %v1987_v60  ;;  %v3711_v60 = vor.u32 %v4154_v58, %v3708_v57  ;;  %v4179_v58 = vld [vmem:[#allocation8 + $0x158] sm:$0xf0]  ;;  %v3804_v57 = vld [vmem:[#allocation8 + $0x15c] sm:$0xf0] }
 0x283   :  { %v1841_v63 = vpop.xlane.xlu0 %1840 }
 0x284   :  { %4223 = vrcp.f32 %v1841_v63 }
 0x285   :  { %4225 = vpow2.f32 %v1887_v11  ;;  %v3672_v11 = vld [vmem:[#allocation8 + $0x54] sm:$0xf0] }
 0x286   :  { %4227 = vpow2.f32 %v2034_v40  ;;  %v3660_v40 = vld [vmem:[#allocation8 + $0x3c] sm:$0xf0] }
 0x28a   :  { %v4224_v55 = vpop.eup %4223 }
 0x28b   :  { %v1843_v9 = vmul.f32 %v4224_v55, %v4220_v49  ;;  %v4226_v17 = vpop.eup %4225  ;;  %v2081_v21 = vpop.xlane.xlu0 %2080  ;;  %v3720_v49 = vld [vmem:[#allocation8 + $0xb4] sm:$0xf0]  ;;  %v3682_v55 = vld [vmem:[#allocation8 + $0x60] sm:$0xf] }
 0x28c   :  { %v1889_v0 = vsel %vm1832_vm2, %v4226_v17, 0.0  ;;  %v4534_v19 = vpop.eup %4227  ;;  %v2082_v18 = vsub.f32 %v2078_v51, %v2081_v21  ;;  %v3723_v50 = vor.u32 %v4157_v48, %v3720_v49  ;;  %v3706_v51 = vld [vmem:[#allocation8 + $0x90] sm:$0xf]  ;;  %v4181_v48 = vld [vmem:[#allocation8 + $0x16c] sm:$0xf] }
 0x28d   :  { %v1844_v2 = vpack.c.bf16 %v1843_v9, %v1843_v9  ;;  %v2036_v20 = vsel %vm1832_vm2, %v4534_v19, 0.0  ;;  %v3707_v56 = vor.u32 %v4155_v54, %v3706_v51  ;;  %v4149_v9 = vld [vmem:[#allocation8 + $0x68] sm:$0xf0]  ;;  %v3886_v49 = vld [vmem:[#allocation8 + $0x1f8] sm:$0xf]  ;;  %v3819_v51 = vor.u32 %v4181_v48, %v3816_v37 }
 0x28e   :  { %v2083_v26 = vmul.f32 1.442695, %v2082_v18  ;;  %v3634_v18 = vld [vmem:[#allocation8] sm:$0xf]  ;;  %v3802_v54 = vld [vmem:[#allocation8 + $0x150] sm:$0xf] }
 0x28f   :  { %3626 = vmatmul.msk.bf16.vlgmr.msrb.gmra.mxu3 %vm1832_vm2, %v1844_v2  ;;  %2610 = vmatpush.bf16.msra.mxu2 %v3707_v56  ;;  %v4148_v2 = vld [vmem:[#allocation8 + $0x64] sm:$0xf]  ;;  %v4178_v56 = vld [vmem:[#allocation8 + $0x154] sm:$0xf] }
 0x290   :  { %1958 = vmatpush.bf16.msrb.mxu3 %v1949_v52  ;;  %v3683_v52 = vor.u32 %v4149_v9, %v3682_v55  ;;  %v4175_v55 = vld [vmem:[#allocation8 + $0x13c] sm:$0xf]  ;;  %v3792_v9 = vld [vmem:[#allocation8 + $0x144] sm:$0xf0] }
 0x29f   :  { %1926 = vmatmul.bf16.vlgmr.msra.gmra.mxu3 %v1916_v3  ;;  %v3687_v3 = vor.u32 %v4148_v2, %v3684_v53  ;;  %v4197_v53 = vld [vmem:[#allocation8 + $0x1e8] sm:$0xf0] }
 0x2a0   :  { %2056 = vmatpush.bf16.msra.mxu3 %v2047_v8  ;;  %v3670_v8 = vld [vmem:[#allocation8 + $0x48] sm:$0xf] }
 0x2a1   :  { %v3671_v10 = vor.u32 %v4146_v6, %v3670_v8 }
 0x2ab   :  { %v1989_v39 = vpop.xlane.xlu0 %1988 }
 0x312   :  { %v4528_v4 = vpop.f32.mrf.mxu3 }
 0x31a   :  { %v1864_v7 = vpop.f32.mrf.mxu3 }
 0x31b   :  { %v4145_v7 = vld [vmem:[#allocation8 + $0x4c] sm:$0xf] }
 0x31c   :  { %v3675_v5 = vor.u32 %v4145_v7, %v3672_v11  ;;  %v3795_v7 = vor.u32 %v4175_v55, %v3792_v9  ;;  %v3822_v11 = vld [vmem:[#allocation8 + $0x170] sm:$0xf]  ;;  %v3714_v55 = vld [vmem:[#allocation8 + $0x98] sm:$0xf]  ;;  %v4156_v9 = vld [vmem:[#allocation8 + $0xa0] sm:$0xf0] }
 0x322   :  { %v1927_v12 = vpop.f32.mrf.mxu3 }
 0x323   :  { %v1931_v14 = vsel %vm4493_vm1, -1e+30, %v1927_v12  ;;  %v3658_v12 = vld [vmem:[#allocation8 + $0x30] sm:$0xf] }
 0x324   :  { %v1932_v16 = vsel %vm1832_vm2, %v1931_v14, -inf }
 0x325   :  { %1933 = vmax.xlane.f32.xlu1 %v1932_v16  ;;  %v3659_v16 = vor.u32 %v4143_v13, %v3658_v12  ;;  %v4173_v12 = vld [vmem:[#allocation8 + $0x128] sm:$0xf0]  ;;  %v4172_v13 = vld [vmem:[#allocation8 + $0x124] sm:$0xf] }
 0x32a   :  { %v1929_v33 = vpop.f32.mrf.mxu3 }
 0x32b   :  { %v3646_v33 = vld [vmem:[#allocation8 + $0x18] sm:$0xf] }
 0x32d   :  { %1890 = vadd.xlane.f32.xlu1 %v1889_v0  ;;  %v4140_v0 = vld [vmem:[#allocation8 + $0x20] sm:$0xf0] }
 0x32e   :  { %v3647_v21 = vor.u32 %v4140_v0, %v3646_v33  ;;  %v3810_v0 = vld [vmem:[#allocation8 + $0x158] sm:$0xf] }
 0x335   :  { %2037 = vadd.xlane.f32.xlu1 %v2036_v20  ;;  %v4139_v20 = vld [vmem:[#allocation8 + $0x1c] sm:$0xf] }
 0x398   :  { %v1934_v23 = vpop.xlane.xlu1 %1933 }
 0x399   :  { %v1935_v22 = vsub.f32 %v1931_v14, %v1934_v23  ;;  %v4142_v14 = vld [vmem:[#allocation8 + $0x34] sm:$0xf]  ;;  %v3648_v23 = vld [vmem:[#allocation8 + $0x24] sm:$0xf0] }
 0x39b   :  { %v1936_v24 = vmul.f32 1.442695, %v1935_v22  ;;  %v3651_v22 = vor.u32 %v4139_v20, %v3648_v23  ;;  %v4180_v20 = vld [vmem:[#allocation8 + $0x160] sm:$0xf0] }
 0x39d   :  { %4229 = vpow2.f32 %v1936_v24  ;;  %v4137_v24 = vld [vmem:[#allocation8 + $0x8] sm:$0xf0] }
 0x39e   :  { %v3635_v27 = vor.u32 %v4137_v24, %v3634_v18  ;;  %v3766_v18 = vld [vmem:[#allocation8 + $0x108] sm:$0xf]  ;;  %v3811_v24 = vor.u32 %v4180_v20, %v3810_v0 }
 0x3a0   :  { %v1891_v28 = vpop.xlane.xlu1 %1890 }
 0x3a1   :  { %4231 = vrcp.f32 %v1891_v28  ;;  %v3636_v28 = vld [vmem:[#allocation8 + $0xc] sm:$0xf0] }
 0x3a2   :  { %4233 = vpow2.f32 %v2083_v26  ;;  %v3639_v30 = vor.u32 %v4136_v25, %v3636_v28  ;;  %v3768_v28 = vld [vmem:[#allocation8 + $0x114] sm:$0xf0] }
 0x3a3   :  { %v4539_v29 = vpop.eup %4229  ;;  %4235 = vrcp.f32 %v1989_v39  ;;  %v4206_v39 = vld [vmem:[#allocation8 + $0x230] sm:$0xf0] }
 0x3a4   :  { %v1938_v32 = vsel %vm1832_vm2, %v4539_v29, 0.0 }
 0x3a5   :  { %1939 = vadd.xlane.f32.xlu2 %v1938_v32 }
 0x3a7   :  { %v4232_v34 = vpop.eup %4231 }
 0x3a8   :  { %v1893_v36 = vmul.f32 %v4232_v34, %v4226_v17  ;;  %v4544_v38 = vpop.eup %4233  ;;  %v3663_v17 = vor.u32 %v4142_v14, %v3660_v40  ;;  %v3780_v14 = vld [vmem:[#allocation8 + $0x12c] sm:$0xf0]  ;;  %v3862_v40 = vld [vmem:[#allocation8 + $0x1c8] sm:$0xf] }
 0x3a9   :  { %v2085_v43 = vsel %vm1832_vm2, %v4544_v38, 0.0  ;;  %v4236_v31 = vpop.eup %4235 }
 0x3aa   :  { %v1894_v41 = vpack.c.bf16 %v1893_v36, %v1893_v36  ;;  %v1991_v44 = vmul.f32 %v4236_v31, %v4517_v59  ;;  %v3694_v59 = vld [vmem:[#allocation8 + $0x78] sm:$0xf]  ;;  %v3910_v36 = vld [vmem:[#allocation8 + $0x228] sm:$0xf] }
 0x3ab   :  { %v3695_v63 = vor.u32 %v4152_v61, %v3694_v59  ;;  %v3911_v31 = vor.u32 %v4206_v39, %v3910_v36  ;;  %v3803_v59 = vor.u32 %v4179_v58, %v3802_v54  ;;  %v3807_v61 = vor.u32 %v4178_v56, %v3804_v57  ;;  %v3826_v57 = vld [vmem:[#allocation8 + $0x180] sm:$0xf] }
 0x3ac   :  { %3627 = vmatmul.msk.bf16.vlgmr.msrb.gmra.mxu1 %vm1832_vm2, %v1894_v41  ;;  %v1992_v45 = vpack.c.bf16 %v1991_v44, %v1991_v44  ;;  %v3898_v41 = vld [vmem:[#allocation8 + $0x210] sm:$0xf]  ;;  %v4203_v44 = vld [vmem:[#allocation8 + $0x218] sm:$0xf0] }
 0x3ad   :  { %2105 = vmatpush.bf16.msrb.mxu1 %v2096_v42  ;;  %2086 = vadd.xlane.f32.xlu2 %v2085_v43  ;;  %v2038_v42 = vpop.xlane.xlu1 %2037  ;;  %v3899_v46 = vor.u32 %v4203_v44, %v3898_v41  ;;  %v4166_v44 = vld [vmem:[#allocation8 + $0xf4] sm:$0xf] }
 0x3ae   :  { %2611 = vmatpush.bf16.msra.mxu2 %v3695_v63  ;;  %2637 = vmatpush.bf16.msra.mxu0 %v3911_v31  ;;  %v4167_v31 = vld [vmem:[#allocation8 + $0xf8] sm:$0xf0] }
 0x3b2   :  { %2612 = vmatpush.bf16.msra.mxu2 %v3683_v52  ;;  %2638 = vmatpush.bf16.msra.mxu0 %v3899_v46  ;;  %v3874_v52 = vld [vmem:[#allocation8 + $0x1e0] sm:$0xf]  ;;  %v3838_v46 = vld [vmem:[#allocation8 + $0x198] sm:$0xf] }
 0x3b6   :  { %2613 = vmatpush.bf16.msra.mxu2 %v3671_v10  ;;  %v3778_v10 = vld [vmem:[#allocation8 + $0x120] sm:$0xf] }
 0x3b7   :  { %v3779_v23 = vor.u32 %v4173_v12, %v3778_v10  ;;  %v3730_v12 = vld [vmem:[#allocation8 + $0xc0] sm:$0xf] }
 0x3ba   :  { %2614 = vmatpush.bf16.msra.mxu2 %v3659_v16 }
 0x3bc   :  { %3629 = vmatmul.msk.bf16.vlgmr.msra.gmra.mxu1 %vm1832_vm2, %v1992_v45  ;;  %v3814_v45 = vld [vmem:[#allocation8 + $0x168] sm:$0xf] }
 0x3bd   :  { %2651 = vmatpush.bf16.msra.mxu1 %v3723_v50  ;;  %v3815_v50 = vor.u32 %v4182_v47, %v3814_v45  ;;  %v3756_v45 = vld [vmem:[#allocation8 + $0xfc] sm:$0xf0]  ;;  %v4188_v47 = vld [vmem:[#allocation8 + $0x1a0] sm:$0xf0] }
 0x3be   :  { %2615 = vmatpush.bf16.msra.mxu2 %v3647_v21  ;;  %v3850_v21 = vld [vmem:[#allocation8 + $0x1b0] sm:$0xf]  ;;  %v3759_v37 = vor.u32 %v4166_v44, %v3756_v45  ;;  %v3839_v58 = vor.u32 %v4188_v47, %v3838_v46  ;;  %v4199_v45 = vld [vmem:[#allocation8 + $0x1fc] sm:$0xf]  ;;  %v3888_v46 = vld [vmem:[#allocation8 + $0x204] sm:$0xf0] }
 0x3bf   :  { %v3750_v47 = vld [vmem:[#allocation8 + $0xe0] sm:$0xf] }
 0x3c1   :  { %2652 = vmatpush.bf16.msra.mxu1 %v3711_v60 }
 0x3c2   :  { %2616 = vmatpush.bf16.msra.mxu2 %v3635_v27  ;;  %v4169_v27 = vld [vmem:[#allocation8 + $0x10c] sm:$0xf] }
 0x3c3   :  { %v3771_v41 = vor.u32 %v4169_v27, %v3768_v28 }
 0x3c5   :  { %2653 = vmatpush.bf16.msra.mxu1 %v3699_v15  ;;  %v4176_v15 = vld [vmem:[#allocation8 + $0x140] sm:$0xf0] }
 0x3c6   :  { %2665 = vmatpush.bf16.msrb.mxu2 %v3819_v51  ;;  %v3791_v6 = vor.u32 %v4176_v15, %v3790_v62  ;;  %v3744_v51 = vld [vmem:[#allocation8 + $0xe4] sm:$0xf0] }
 0x3c9   :  { %2654 = vmatpush.bf16.msra.mxu1 %v3687_v3 }
 0x3ca   :  { %2666 = vmatpush.bf16.msrb.mxu2 %v3807_v61  ;;  %v4159_v61 = vld [vmem:[#allocation8 + $0xb8] sm:$0xf0] }
 0x3cd   :  { %2655 = vmatpush.bf16.msra.mxu1 %v3675_v5  ;;  %v4183_v5 = vld [vmem:[#allocation8 + $0x178] sm:$0xf0] }
 0x3ce   :  { %v3823_v16 = vor.u32 %v4183_v5, %v3822_v11  ;;  %2667 = vmatpush.bf16.msrb.mxu2 %v3795_v7  ;;  %v4174_v7 = vld [vmem:[#allocation8 + $0x130] sm:$0xf0]  ;;  %v3690_v11 = vld [vmem:[#allocation8 + $0x68] sm:$0xf] }
 0x3cf   :  { %v4150_v5 = vld [vmem:[#allocation8 + $0x70] sm:$0xf0] }
 0x3d1   :  { %2656 = vmatpush.bf16.msra.mxu1 %v3663_v17  ;;  %v4194_v17 = vld [vmem:[#allocation8 + $0x1d0] sm:$0xf0] }
 0x3d2   :  { %v3863_v25 = vor.u32 %v4194_v17, %v3862_v40  ;;  %v3732_v40 = vld [vmem:[#allocation8 + $0xcc] sm:$0xf0]  ;;  %v4205_v17 = vld [vmem:[#allocation8 + $0x22c] sm:$0xf] }
 0x3d5   :  { %2657 = vmatpush.bf16.msra.mxu1 %v3651_v22  ;;  %v3783_v22 = vor.u32 %v4172_v13, %v3780_v14  ;;  %v4161_v13 = vld [vmem:[#allocation8 + $0xc8] sm:$0xf0]  ;;  %v4160_v14 = vld [vmem:[#allocation8 + $0xc4] sm:$0xf] }
 0x3d6   :  { %v3735_v0 = vor.u32 %v4160_v14, %v3732_v40  ;;  %v4192_v14 = vld [vmem:[#allocation8 + $0x1c0] sm:$0xf0]  ;;  %v4187_v40 = vld [vmem:[#allocation8 + $0x19c] sm:$0xf] }
 0x3d7   :  { %2668 = vmatpush.bf16.msrb.mxu2 %v3783_v22  ;;  %v3918_v22 = vld [vmem:[#allocation8 + $0x230] sm:$0xf] }
 0x3d9   :  { %2658 = vmatpush.bf16.msra.mxu1 %v3639_v30 }
 0x3db   :  { %2669 = vmatpush.bf16.msrb.mxu2 %v3771_v41 }
 0x3df   :  { %2670 = vmatpush.bf16.msrb.mxu2 %v3759_v37  ;;  %v4165_v37 = vld [vmem:[#allocation8 + $0xe8] sm:$0xf0] }
 0x418   :  { %v1940_v26 = vpop.xlane.xlu2 %1939 }
 0x419   :  { %4237 = vrcp.f32 %v1940_v26  ;;  %v4170_v26 = vld [vmem:[#allocation8 + $0x110] sm:$0xf0] }
 0x41a   :  { %v3767_v39 = vor.u32 %v4170_v26, %v3766_v18  ;;  %v4147_v26 = vld [vmem:[#allocation8 + $0x58] sm:$0xf0] }
 0x41f   :  { %v4238_v32 = vpop.eup %4237 }
 0x420   :  { %v1942_v34 = vmul.f32 %v4238_v32, %v4539_v29  ;;  %v2087_v35 = vpop.xlane.xlu2 %2086  ;;  %v4200_v29 = vld [vmem:[#allocation8 + $0x200] sm:$0xf0]  ;;  %v4191_v32 = vld [vmem:[#allocation8 + $0x1b8] sm:$0xf0] }
 0x421   :  { %4239 = vrcp.f32 %v2087_v35  ;;  %v3887_v1 = vor.u32 %v4200_v29, %v3886_v49  ;;  %v4177_v35 = vld [vmem:[#allocation8 + $0x148] sm:$0xf0]  ;;  %v3742_v49 = vld [vmem:[#allocation8 + $0xd8] sm:$0xf]  ;;  %v4164_v29 = vld [vmem:[#allocation8 + $0xe0] sm:$0xf0] }
 0x422   :  { %v1943_v43 = vpack.c.bf16 %v1942_v34, %v1942_v34  ;;  %4241 = vrcp.f32 %v2038_v42  ;;  %v3798_v34 = vld [vmem:[#allocation8 + $0x140] sm:$0xf]  ;;  %v3754_v42 = vld [vmem:[#allocation8 + $0xf0] sm:$0xf]  ;;  %v3743_v62 = vor.u32 %v4164_v29, %v3742_v49  ;;  %v4201_v29 = vld [vmem:[#allocation8 + $0x208] sm:$0xf0] }
 0x423   :  { %2639 = vmatpush.bf16.msra.mxu0 %v3887_v1  ;;  %v3799_v36 = vor.u32 %v4177_v35, %v3798_v34  ;;  %v3755_v48 = vor.u32 %v4167_v31, %v3754_v42  ;;  %v3762_v34 = vld [vmem:[#allocation8 + $0xf8] sm:$0xf]  ;;  %v4144_v31 = vld [vmem:[#allocation8 + $0x40] sm:$0xf0]  ;;  %v3894_v49 = vld [vmem:[#allocation8 + $0x200] sm:$0xf] }
 0x424   :  { %3628 = vmatmul.msk.bf16.vlgmr.msrb.gmra.mxu3 %vm1832_vm2, %v1943_v43  ;;  %v3851_v43 = vor.u32 %v4191_v32, %v3850_v21  ;;  %v3774_v21 = vld [vmem:[#allocation8 + $0x110] sm:$0xf]  ;;  %v3900_v32 = vld [vmem:[#allocation8 + $0x21c] sm:$0xf0] }
 0x425   :  { %2623 = vmatpush.bf16.msrb.mxu3 %v3815_v50  ;;  %v4163_v50 = vld [vmem:[#allocation8 + $0xdc] sm:$0xf] }
 0x427   :  { %v4240_v60 = vpop.eup %4239 }
 0x428   :  { %v2089_v63 = vmul.f32 %v4240_v60, %v4544_v38  ;;  %v4242_v8 = vpop.eup %4241  ;;  %v3875_v38 = vor.u32 %v4197_v53, %v3874_v52  ;;  %v4185_v60 = vld [vmem:[#allocation8 + $0x188] sm:$0xf0]  ;;  %v3715_v52 = vor.u32 %v4156_v9, %v3714_v55  ;;  %v3702_v53 = vld [vmem:[#allocation8 + $0x80] sm:$0xf] }
 0x429   :  { %v4555_v2 = vpop.f32.mrf.mxu1  ;;  %2624 = vmatpush.bf16.msrb.mxu3 %v3803_v59  ;;  %v2040_v33 = vmul.f32 %v4242_v8, %v4534_v19  ;;  %v3726_v59 = vld [vmem:[#allocation8 + $0xb0] sm:$0xf]  ;;  %v3827_v1 = vor.u32 %v4185_v60, %v3826_v57  ;;  %v4196_v60 = vld [vmem:[#allocation8 + $0x1e4] sm:$0xf] }
 0x42a   :  { %v2090_v3 = vpack.c.bf16 %v2089_v63, %v2089_v63  ;;  %2640 = vmatpush.bf16.msra.mxu0 %v3875_v38  ;;  %v3747_v63 = vor.u32 %v4163_v50, %v3744_v51  ;;  %v3727_v15 = vor.u32 %v4159_v61, %v3726_v59  ;;  %v3691_v38 = vor.u32 %v4150_v5, %v3690_v11  ;;  %v3876_v59 = vld [vmem:[#allocation8 + $0x1ec] sm:$0xf0]  ;;  %v3738_v61 = vld [vmem:[#allocation8 + $0xc8] sm:$0xf]  ;;  %v4190_v5 = vld [vmem:[#allocation8 + $0x1b4] sm:$0xf] }
 0x42b   :  { %v2041_v19 = vpack.c.bf16 %v2040_v33, %v2040_v33  ;;  %v3912_v33 = vld [vmem:[#allocation8 + $0x234] sm:$0xf0]  ;;  %v3751_v50 = vor.u32 %v4165_v37, %v3750_v47  ;;  %v3895_v51 = vor.u32 %v4201_v29, %v3894_v49 }
 0x42c   :  { %3631 = vmatmul.msk.bf16.vlgmr.msrb.gmra.mxu1 %vm1832_vm2, %v2090_v3  ;;  %2671 = vmatpush.bf16.msrb.mxu2 %v3747_v63  ;;  %v4153_v3 = vld [vmem:[#allocation8 + $0x88] sm:$0xf0]  ;;  %v3915_v20 = vor.u32 %v4205_v17, %v3912_v33  ;;  %v4162_v63 = vld [vmem:[#allocation8 + $0xd0] sm:$0xf0]  ;;  %v3840_v17 = vld [vmem:[#allocation8 + $0x1a4] sm:$0xf0] }
 0x42d   :  { %2707 = vmatpush.bf16.msrb.mxu1 %v3823_v16  ;;  %2625 = vmatpush.bf16.msrb.mxu3 %v3791_v6  ;;  %v3703_v8 = vor.u32 %v4153_v3, %v3702_v53  ;;  %v3786_v6 = vld [vmem:[#allocation8 + $0x128] sm:$0xf]  ;;  %v3731_v16 = vor.u32 %v4161_v13, %v3730_v12  ;;  %v3739_v55 = vor.u32 %v4162_v63, %v3738_v61  ;;  %v4193_v3 = vld [vmem:[#allocation8 + $0x1cc] sm:$0xf]  ;;  %v3858_v12 = vld [vmem:[#allocation8 + $0x1b8] sm:$0xf] }
 0x42e   :  { %2641 = vmatpush.bf16.msra.mxu0 %v3863_v25  ;;  %v3787_v10 = vor.u32 %v4174_v7, %v3786_v6  ;;  %v3678_v25 = vld [vmem:[#allocation8 + $0x50] sm:$0xf]  ;;  %v3846_v33 = vld [vmem:[#allocation8 + $0x1a0] sm:$0xf] }
 0x42f   :  { %v3679_v28 = vor.u32 %v4147_v26, %v3678_v25  ;;  %v3870_v7 = vld [vmem:[#allocation8 + $0x1d0] sm:$0xf]  ;;  %v4186_v25 = vld [vmem:[#allocation8 + $0x190] sm:$0xf0] }
 0x430   :  { %2672 = vmatpush.bf16.msrb.mxu2 %v3735_v0  ;;  %v3843_v0 = vor.u32 %v4187_v40, %v3840_v17 }
 0x431   :  { %v1913_v30 = vpop.f32.mrf.mxu1  ;;  %2708 = vmatpush.bf16.msrb.mxu1 %v3811_v24  ;;  %2626 = vmatpush.bf16.msrb.mxu3 %v3779_v23  ;;  %v4171_v23 = vld [vmem:[#allocation8 + $0x118] sm:$0xf0] }
 0x432   :  { %2642 = vmatpush.bf16.msra.mxu0 %v3851_v43  ;;  %v3775_v18 = vor.u32 %v4171_v23, %v3774_v21  ;;  %v4207_v24 = vld [vmem:[#allocation8 + $0x238] sm:$0xf0]  ;;  %v4202_v30 = vld [vmem:[#allocation8 + $0x214] sm:$0xf]  ;;  %v3666_v43 = vld [vmem:[#allocation8 + $0x38] sm:$0xf] }
 0x433   :  { %v3919_v27 = vor.u32 %v4207_v24, %v3918_v22  ;;  %v3903_v35 = vor.u32 %v4202_v30, %v3900_v32  ;;  %v3667_v44 = vor.u32 %v4144_v31, %v3666_v43  ;;  %v4184_v23 = vld [vmem:[#allocation8 + $0x184] sm:$0xf]  ;;  %v3828_v22 = vld [vmem:[#allocation8 + $0x18c] sm:$0xf0]  ;;  %v2217_v43 = vld [vmem:[#allocation9] sm:$0x7] }
 0x434   :  { %3630 = vmatmul.msk.bf16.vlgmr.msra.gmra.mxu3 %vm1832_vm2, %v2041_v19  ;;  %v4168_v19 = vld [vmem:[#allocation8 + $0x100] sm:$0xf0]  ;;  %v3831_v24 = vor.u32 %v4184_v23, %v3828_v22 }
 0x435   :  { %2709 = vmatpush.bf16.msrb.mxu1 %v3799_v36  ;;  %2627 = vmatpush.bf16.msrb.mxu3 %v3767_v39  ;;  %v3906_v36 = vld [vmem:[#allocation8 + $0x218] sm:$0xf]  ;;  %v4204_v39 = vld [vmem:[#allocation8 + $0x220] sm:$0xf0]  ;;  %v3763_v41 = vor.u32 %v4168_v19, %v3762_v34 }
 0x436   :  { %2643 = vmatpush.bf16.msra.mxu0 %v3839_v58  ;;  %v3907_v42 = vor.u32 %v4204_v39, %v3906_v36  ;;  %v4141_v58 = vld [vmem:[#allocation8 + $0x28] sm:$0xf0] }
 0x439   :  { %v2009_v54 = vpop.f32.mrf.mxu1  ;;  %2628 = vmatpush.bf16.msrb.mxu3 %v3755_v48  ;;  %2710 = vmatpush.bf16.msrb.mxu1 %v3787_v10  ;;  %v3891_v48 = vor.u32 %v4199_v45, %v3888_v46  ;;  %v4195_v10 = vld [vmem:[#allocation8 + $0x1d8] sm:$0xf0] }
 0x43a   :  { %v4561_v56 = vpack.c.bf16 %v2009_v54, %v4528_v4  ;;  %2644 = vmatpush.bf16.msra.mxu0 %v3827_v1  ;;  %v3654_v54 = vld [vmem:[#allocation8 + $0x20] sm:$0xf]  ;;  %v3882_v1 = vld [vmem:[#allocation8 + $0x1e8] sm:$0xf]  ;;  %v3871_v11 = vor.u32 %v4195_v10, %v3870_v7 }
 0x43b   :  { %v3655_v57 = vor.u32 %v4141_v58, %v3654_v54  ;;  %v2220_v58 = vperm.slane %v2217_v43, 1 }
 0x43c   :  { %2617 = vmatmul.bf16.vlgmr.msra.gmra.mxu2 %v4561_v56  ;;  %2659 = vmatmul.bf16.vlgmr.msra.gmra.mxu1 %v4561_v56 }
 0x43d   :  { %2629 = vmatpush.bf16.msrb.mxu3 %v3743_v62  ;;  %2711 = vmatpush.bf16.msrb.mxu1 %v3775_v18  ;;  %v3879_v62 = vor.u32 %v4196_v60, %v3876_v59  ;;  %v3834_v18 = vld [vmem:[#allocation8 + $0x188] sm:$0xf] }
 0x43e   :  { %2693 = vmatpush.bf16.msrb.mxu0 %v3727_v15  ;;  %2721 = vmatpush.bf16.msra.mxu2 %v3919_v27  ;;  %v4198_v15 = vld [vmem:[#allocation8 + $0x1f0] sm:$0xf0]  ;;  %v3835_v27 = vor.u32 %v4186_v25, %v3834_v18 }
 0x43f   :  { %v3883_v9 = vor.u32 %v4198_v15, %v3882_v1 }
 0x441   :  { %v2011_v4 = vpop.f32.mrf.mxu1  ;;  %2630 = vmatpush.bf16.msrb.mxu3 %v3731_v16  ;;  %2712 = vmatpush.bf16.msrb.mxu1 %v3763_v41  ;;  %v3859_v16 = vor.u32 %v4192_v14, %v3858_v12 }
 0x442   :  { %2694 = vmatpush.bf16.msrb.mxu0 %v3715_v52  ;;  %2722 = vmatpush.bf16.msra.mxu2 %v3907_v42  ;;  %v3642_v4 = vld [vmem:[#allocation8 + $0x8] sm:$0xf]  ;;  %v4138_v52 = vld [vmem:[#allocation8 + $0x10] sm:$0xf0] }
 0x443   :  { %v3643_v53 = vor.u32 %v4138_v52, %v3642_v4 }
 0x445   :  { %2679 = vmatpush.bf16.msra.mxu3 %v3915_v20  ;;  %2713 = vmatpush.bf16.msrb.mxu1 %v3751_v50  ;;  %v4189_v20 = vld [vmem:[#allocation8 + $0x1a8] sm:$0xf0] }
 0x446   :  { %2695 = vmatpush.bf16.msrb.mxu0 %v3703_v8  ;;  %2723 = vmatpush.bf16.msra.mxu2 %v3895_v51  ;;  %v3864_v8 = vld [vmem:[#allocation8 + $0x1d4] sm:$0xf0]  ;;  %v3847_v21 = vor.u32 %v4189_v20, %v3846_v33 }
 0x447   :  { %v3867_v6 = vor.u32 %v4193_v3, %v3864_v8 }
 0x449   :  { %2680 = vmatpush.bf16.msra.mxu3 %v3903_v35  ;;  %2714 = vmatpush.bf16.msrb.mxu1 %v3739_v55 }
 0x44a   :  { %2696 = vmatpush.bf16.msrb.mxu0 %v3691_v38  ;;  %2724 = vmatpush.bf16.msra.mxu2 %v3883_v9  ;;  %v3852_v38 = vld [vmem:[#allocation8 + $0x1bc] sm:$0xf0] }
 0x44b   :  { %v3855_v13 = vor.u32 %v4190_v5, %v3852_v38 }
 0x44d   :  { %2681 = vmatpush.bf16.msra.mxu3 %v3891_v48 }
 0x44e   :  { %2697 = vmatpush.bf16.msrb.mxu0 %v3679_v28  ;;  %2725 = vmatpush.bf16.msra.mxu2 %v3871_v11 }
 0x451   :  { %2682 = vmatpush.bf16.msra.mxu3 %v3879_v62 }
 0x452   :  { %2698 = vmatpush.bf16.msrb.mxu0 %v3667_v44  ;;  %2726 = vmatpush.bf16.msra.mxu2 %v3859_v16  ;;  %v2219_v44 = vperm.slane %v2217_v43, 0 }
 0x455   :  { %2683 = vmatpush.bf16.msra.mxu3 %v3867_v6 }
 0x456   :  { %2699 = vmatpush.bf16.msrb.mxu0 %v3655_v57  ;;  %2727 = vmatpush.bf16.msra.mxu2 %v3847_v21 }
 0x459   :  { %2684 = vmatpush.bf16.msra.mxu3 %v3855_v13 }
 0x45a   :  { %2700 = vmatpush.bf16.msrb.mxu0 %v3643_v53  ;;  %2728 = vmatpush.bf16.msra.mxu2 %v3835_v27 }
 0x45d   :  { %2685 = vmatpush.bf16.msra.mxu3 %v3843_v0 }
 0x461   :  { %2686 = vmatpush.bf16.msra.mxu3 %v3831_v24 }
 0x4a7   :  { %v1960_v26 = vpop.f32.mrf.mxu3 }
 0x4a9   :  { %v2107_v28 = vpop.f32.mrf.mxu1 }
 0x4aa   :  { %v2120_v30 = vpack.c.bf16 %v2107_v28, %v1960_v26 }
 0x4ac   :  { %2645 = vmatmul.bf16.vlgmr.msra.gmra.mxu0 %v2120_v30 }
 0x4af   :  { %v1962_v32 = vpop.f32.mrf.mxu3 }
 0x4b1   :  { %v2109_v34 = vpop.f32.mrf.mxu1 }
 0x4b7   :  { %v2058_v35 = vpop.f32.mrf.mxu3 }
 0x4b8   :  { %v2119_v19 = vpack.c.bf16 %v2058_v35, %v4555_v2 }
 0x4b9   :  { %v2660_v31 = vpop.f32.mrf.mxu1 }
 0x4ba   :  { %2631 = vmatmul.bf16.vlgmr.msrb.gmra.mxu3 %v2119_v19  ;;  %2673 = vmatmul.bf16.vlgmr.msrb.gmra.mxu2 %v2119_v19  ;;  %v2661_v62 = vadd.f32 %v2660_v31, %v2220_v58 }
 0x4bb   :  { %2715 = vmatmul.bf16.vlgmr.msrb.gmra.mxu1 %v2119_v19 }
 0x4bc   :  { %2701 = vmatmul.bf16.vlgmr.msrb.gmra.mxu0 %v4561_v56  ;;  %v2221_v56 = vperm.slane %v2217_v43, 2 }
 0x4bf   :  { %v2060_v36 = vpop.f32.mrf.mxu3  ;;  %v2618_v39 = vpop.f32.mrf.mxu2 }
 0x4c0   :  { %v2619_v46 = vadd.f32 %v2618_v39, %v2219_v44 }
 0x4c1   :  { %v2662_v49 = vpop.f32.mrf.mxu1 }
 0x4c2   :  { %v2663_v3 = vadd.f32 %v2662_v49, %v2220_v58 }
 0x4c7   :  { %v2620_v42 = vpop.f32.mrf.mxu2 }
 0x4c8   :  { %v2621_v50 = vadd.f32 %v2620_v42, %v2219_v44 }
 0x4ca   :  { %2687 = vmatmul.bf16.vlgmr.msra.gmra.mxu3 %v2120_v30  ;;  %2729 = vmatmul.bf16.vlgmr.msra.gmra.mxu2 %v2120_v30 }
 0x529   :  { %v2646_v41 = vpop.f32.mrf.mxu0 }
 0x531   :  { %v2648_v45 = vpop.f32.mrf.mxu0 }
 0x538   :  { %v2716_v61 = vpop.f32.mrf.mxu1 }
 0x539   :  { %v2702_v29 = vpop.f32.mrf.mxu0 }
 0x53a   :  { %v2703_v60 = vadd.f32 %v2702_v29, %v2221_v56 }
 0x53c   :  { %v2717_v15 = vadd.f32 %v2716_v61, %v2703_v60 }
 0x53d   :  { %v2632_v47 = vpop.f32.mrf.mxu3  ;;  %v2674_v48 = vpop.f32.mrf.mxu2 }
 0x53e   :  { %v2633_v37 = vadd.f32 %v2632_v47, %v2619_v46  ;;  %v2675_v63 = vadd.f32 %v2674_v48, %v2661_v62 }
 0x540   :  { %v2647_v2 = vadd.f32 %v2646_v41, %v2633_v37  ;;  %v2718_v8 = vpop.f32.mrf.mxu1 }
 0x541   :  { %v2704_v1 = vpop.f32.mrf.mxu0 }
 0x542   :  { %2735 = vst [vmem:[#allocation11] sm:$0xff] %v2647_v2  ;;  %v2705_v53 = vadd.f32 %v2704_v1, %v2221_v56 }
 0x544   :  { %v2719_v7 = vadd.f32 %v2718_v8, %v2705_v53 }
 0x545   :  { %v2634_v51 = vpop.f32.mrf.mxu3  ;;  %v2676_v54 = vpop.f32.mrf.mxu2 }
 0x546   :  { %v2635_v57 = vadd.f32 %v2634_v51, %v2621_v50  ;;  %v2677_v6 = vadd.f32 %v2676_v54, %v2663_v3 }
 0x548   :  { %v2649_v59 = vadd.f32 %v2648_v45, %v2635_v57 }
 0x54a   :  { %2738 = vst [vmem:[#allocation11 + $0x18] sm:$0xff] %v2649_v59 }
 0x54d   :  { %v2688_v55 = vpop.f32.mrf.mxu3  ;;  %v2730_v9 = vpop.f32.mrf.mxu2 }
 0x54e   :  { %v2689_v4 = vadd.f32 %v2688_v55, %v2675_v63  ;;  %v2731_v52 = vadd.f32 %v2730_v9, %v2717_v15 }
 0x550   :  { %2736 = vst [vmem:[#allocation11 + $0x8] sm:$0xff] %v2689_v4 }
 0x551   :  { %2737 = vst [vmem:[#allocation11 + $0x10] sm:$0xff] %v2731_v52 }
 0x555   :  { %v2690_v10 = vpop.f32.mrf.mxu3  ;;  %v2732_v11 = vpop.f32.mrf.mxu2 }
 0x556   :  { %v2691_v5 = vadd.f32 %v2690_v10, %v2677_v6  ;;  %v2733_v38 = vadd.f32 %v2732_v11, %v2719_v7 }
 0x558   :  { %2739 = vst [vmem:[#allocation11 + $0x20] sm:$0xff] %v2691_v5 }
 0x559   :  { %2740 = vst [vmem:[#allocation11 + $0x28] sm:$0xff] %v2733_v38 }
 0x55a   :  { %2753 = dma.vmem_to_hbm [thread:$0]  %s2746_s3, 768, %s2748_s15, [#allocation5], %s4375_s27, %s4375_s27, %s4376_s28  }
 0x55b   :  { %4369 = dma.done.wait [#allocation5], 768  }
 0x55c   :  { %4370 = vsyncadd [#allocation5], 4294966528 }
 0x55d   :  { %2758 = vsyncpa [#allocation4], 1 }
 0x55e   :  { %2759 = vsyncpa [#allocation7], 1 }
 0x55f   :  { %2760 = vsyncpa [#allocation10], 1 }
 0x560   :  { %2761 = vsyncpa [#allocation5], 1 }

</bundles_post_ra>
